<compile_context>
chip_gen: v5e
topology: v5e:2x2
jax: 0.10.0
libtpu: 0.0.40
codegen_flags: <defaults>
</compile_context>

<pallas_src>
import functools

import jax
import jax.numpy as jnp
from jax import lax
from jax.experimental import pallas as pl
from jax.experimental.pallas import tpu as pltpu


_SUBLANES = 8   # f32 sublane count; batch / small feature dims padded to this


def _round_up(n, m):
    return -(-n // m) * m


def _slab_offsets(EP, H, RP):
    """Row offsets of each operand inside the packed (rows, 4H) weight slab."""
    return {
        "wih_e": 0,                       # (EP, 4H)
        "whh_e": EP,                      # (H, 4H)
        "wih_dr": EP + H,                 # (RP, 4H)
        "whh_d": EP + H + RP,             # (H, 4H)
        "w_rec": EP + 2 * H + RP,         # (H, 4H)
        "wfc": EP + 3 * H + RP,           # (H, 4H)   (cols O.. are zero)
        "bias": EP + 4 * H + RP,          # rows: b_e, b_rec, b_corr, bfc_pad
        "total": EP + 4 * H + RP + _SUBLANES,
    }


# ----------------------------- Pallas kernel --------------------------------
def _seq2seq_kernel(
    src_ref,    # (S*BP, EP)  encoder inputs, time-major rows (row = t*BP + b)
    rain_ref,   # (T*BP, RP)  rain forecasts, time-major rows
    w_ref,      # (rows, 4H)  packed weight/bias slab (see _slab_offsets)
    out_ref,    # (T*BP, 4H)  outputs, lane-padded (cols O.. are garbage-free 0)
    *, S, T, BP, H, EP, RP,
):
    f32 = jnp.float32
    off = _slab_offsets(EP, H, RP)

    wih_e = w_ref[off["wih_e"]:off["wih_e"] + EP, :]
    whh_e = w_ref[off["whh_e"]:off["whh_e"] + H, :]
    wih_dr = w_ref[off["wih_dr"]:off["wih_dr"] + RP, :]
    whh_d = w_ref[off["whh_d"]:off["whh_d"] + H, :]
    w_rec = w_ref[off["w_rec"]:off["w_rec"] + H, :]
    wfc = w_ref[off["wfc"]:off["wfc"] + H, :]
    b = off["bias"]
    b_e = w_ref[b + 0:b + 1, :]       # encoder bias (b_ih + b_hh)
    b_rec = w_ref[b + 1:b + 2, :]     # fused decoder bias, t >= 1
    b_corr = w_ref[b + 2:b + 3, :]    # (b_d0 - b_rec), correction for t == 0
    bfc = w_ref[b + 3:b + 4, :]       # FC bias, lane-padded to 4H

    def lstm_step(gates, c):
        # One full-width sigmoid + one full-width tanh over the (BP, 4H) gate
        # vector (2 EUP pushes), then static lane slices i, f, g, o.
        # TODO(synk): if bundle dumps show XLU lane-rotates on the chain here,
        # reorder gate columns wrapper-side so operands share a lane block.
        sig = jax.nn.sigmoid(gates)
        th = jnp.tanh(gates)
        i = sig[:, 0 * H:1 * H]
        f = sig[:, 1 * H:2 * H]
        g = th[:, 2 * H:3 * H]
        o = sig[:, 3 * H:4 * H]
        c_new = f * c + i * g
        h_new = o * jnp.tanh(c_new)
        return h_new, c_new

    # ---- batched input-side projections (independent of h/c, off the chain),
    # with biases folded in so the recurrences carry no per-step bias adds.
    enc_g = jnp.dot(src_ref[...], wih_e, preferred_element_type=f32) + b_e
    rain_g = jnp.dot(rain_ref[...], wih_dr, preferred_element_type=f32) + b_rec

    # ---- encoder recurrence (fully unrolled, sublane-aligned slices) --------
    h = jnp.zeros((BP, H), f32)
    c = jnp.zeros((BP, H), f32)
    for t in range(S):
        gates = enc_g[t * BP:(t + 1) * BP, :] + jnp.dot(
            h, whh_e, preferred_element_type=f32)
        h, c = lstm_step(gates, c)

    # ---- decoder recurrence (fully unrolled, FC feedback folded into w_rec) -
    # TODO(synk): stage the loop-invariant whh_e / w_rec in the MXU across
    # steps via pltpu.matmul_push_rhs / matmul_acc_lhs / matmul_pop to avoid
    # re-pushing the same (H, 4H) RHS every serial step.
    hs = []
    for t in range(T):
        rg = rain_g[t * BP:(t + 1) * BP, :]
        if t == 0:
            # decoder_input is zeros at the first step -> no FC-feedback term.
            gates = rg + b_corr + jnp.dot(h, whh_d, preferred_element_type=f32)
        else:
            gates = rg + jnp.dot(h, w_rec, preferred_element_type=f32)
        h, c = lstm_step(gates, c)
        hs.append(h)

    # ---- batched FC head: hidden states stay in vregs, one matmul + one
    # unmasked, lane-dense (T*BP, 4H) store.
    h_all = jnp.concatenate(hs, axis=0)                       # (T*BP, H)
    out_ref[...] = jnp.dot(h_all, wfc, preferred_element_type=f32) + bfc


# ------------------------------ wrapper --------------------------------------
@functools.partial(jax.jit, static_argnames=("target_len",))
def hydro_seq2seq(src, rain_forecasts, params, target_len):
    """src: (B, S, E), rain_forecasts: (B, T, R)  ->  outputs: (B, T, O)."""
    B, S, E = src.shape
    T = target_len
    R = rain_forecasts.shape[-1]
    H = params["w_hh_e"].shape[1]
    O = params["w_fc"].shape[0]
    G = 4 * H
    f32 = jnp.float32
    assert O <= G

    BP = _round_up(B, _SUBLANES)       # pad batch to full sublanes
    EP = _round_up(E, _SUBLANES)
    RP = _round_up(R, _SUBLANES)

    # Time-major, zero-pad batch & feature dims, flatten to 2D (row = t*BP + b)
    # so every in-kernel matmul is a plain, aligned 2D x @ W on the MXU.
    src_tm = jnp.transpose(src.astype(f32), (1, 0, 2))             # (S, B, E)
    src_tm = jnp.pad(src_tm, ((0, 0), (0, BP - B), (0, EP - E)))
    src2d = src_tm.reshape(S * BP, EP)
    rain_tm = jnp.transpose(rain_forecasts.astype(f32), (1, 0, 2))  # (T, B, R)
    rain_tm = jnp.pad(rain_tm, ((0, 0), (0, BP - B), (0, RP - R)))
    rain2d = rain_tm.reshape(T * BP, RP)

    # Pre-transpose weights for x @ W form; fold the two LSTM biases together.
    wih_e_t = params["w_ih_e"].T.astype(f32)                        # (E, 4H)
    whh_e_t = params["w_hh_e"].T.astype(f32)                        # (H, 4H)
    b_e = (params["b_ih_e"] + params["b_hh_e"])[None, :].astype(f32)  # (1, 4H)

    wih_d_t = params["w_ih_d"].T.astype(f32)                        # (O+R, 4H)
    wih_do_t = wih_d_t[:O, :]                                       # (O, 4H)
    wih_dr_t = wih_d_t[O:, :]                                       # (R, 4H)
    whh_d_t = params["w_hh_d"].T.astype(f32)                        # (H, 4H)
    wfc_t = params["w_fc"].T.astype(f32)                            # (H, O)
    bfc = params["b_fc"][None, :].astype(f32)                       # (1, O)

    b_d0 = (params["b_ih_d"] + params["b_hh_d"])[None, :].astype(f32)  # (1, 4H)
    # FC-feedback fusion (exact algebra, composed in f32 at HIGHEST precision):
    #   dec_in_t @ wih_do = h_{t-1} @ (wfc @ wih_do) + b_fc @ wih_do   (t >= 1)
    hi = lax.Precision.HIGHEST
    w_rec = whh_d_t + jnp.dot(wfc_t, wih_do_t, precision=hi)        # (H, 4H)
    b_rec = b_d0 + jnp.dot(bfc, wih_do_t, precision=hi)             # (1, 4H)
    b_corr = b_d0 - b_rec                                           # (1, 4H)

    # Lane-pad the FC head to 4H columns -> unmasked lane-dense output store.
    wfc_pad = jnp.pad(wfc_t, ((0, 0), (0, G - O)))                  # (H, 4H)
    bfc_pad = jnp.pad(bfc, ((0, 0), (0, G - O)))                    # (1, 4H)

    # Pack all weights/biases into one slab -> 3 HBM->VMEM DMAs instead of 12.
    def pad_rows(a, rows):
        return jnp.pad(a, ((0, rows - a.shape[0]), (0, 0)))

    bias_block = pad_rows(
        jnp.concatenate([b_e, b_rec, b_corr, bfc_pad], axis=0), _SUBLANES)
    wslab = jnp.concatenate([
        pad_rows(wih_e_t, EP),
        whh_e_t,
        pad_rows(wih_dr_t, RP),
        whh_d_t,
        w_rec,
        wfc_pad,
        bias_block,
    ], axis=0)                                                      # (152, 4H)
    assert wslab.shape == (_slab_offsets(EP, H, RP)["total"], G)

    vmem = pl.BlockSpec(memory_space=pltpu.MemorySpace.VMEM)
    kernel = functools.partial(_seq2seq_kernel,
                               S=S, T=T, BP=BP, H=H, EP=EP, RP=RP)

    out2d = pl.pallas_call(
        kernel,
        out_shape=jax.ShapeDtypeStruct((T * BP, G), f32),
        in_specs=[vmem, vmem, vmem],
        out_specs=vmem,
    )(src2d, rain2d, wslab)
    # TODO(synk): on v7x, once BP grows past one tile, add a leading grid over
    # batch tiles with dimension_semantics=("parallel",) (and 64 MiB-aware
    # block sizes) so both TensorCores run independent recurrences.
    out = out2d.reshape(T, BP, G)[:, :B, :O]                        # (T, B, O)
    return jnp.transpose(out, (1, 0, 2))                            # (B, T, O)


# --------------------------- pure-JAX reference ------------------------------
def _reference(src, rain_forecasts, params, target_len):
    H = params["w_hh_e"].shape[1]
    O = params["w_fc"].shape[0]
    B = src.shape[0]

    def lstm_step(x, h, c, w_ih, w_hh, b_ih, b_hh):
        gates = x @ w_ih.T + b_ih + h @ w_hh.T + b_hh
        i = jax.nn.sigmoid(gates[:, 0 * H:1 * H])
        f = jax.nn.sigmoid(gates[:, 1 * H:2 * H])
        g = jnp.tanh(gates[:, 2 * H:3 * H])
        o = jax.nn.sigmoid(gates[:, 3 * H:4 * H])
        c = f * c + i * g
        h = o * jnp.tanh(c)
        return h, c

    h = jnp.zeros((B, H), jnp.float32)
    c = jnp.zeros((B, H), jnp.float32)
    for t in range(src.shape[1]):
        h, c = lstm_step(src[:, t, :], h, c,
                         params["w_ih_e"], params["w_hh_e"],
                         params["b_ih_e"], params["b_hh_e"])

    dec_in = jnp.zeros((B, O), jnp.float32)
    outs = []
    for t in range(target_len):
        x = jnp.concatenate([dec_in, rain_forecasts[:, t, :]], axis=-1)
        h, c = lstm_step(x, h, c,
                         params["w_ih_d"], params["w_hh_d"],
                         params["b_ih_d"], params["b_hh_d"])
        out = h @ params["w_fc"].T + params["b_fc"]
        outs.append(out)
        dec_in = out
    return jnp.stack(outs, axis=1)  # (B, T, O)


# --------------------------------- main --------------------------------------
if __name__ == "__main__":
    # Small shapes consistent with the module's forward:
    B, S, E = 2, 8, 4          # batch, encoder seq length, encoder features
    H = 32                     # LSTM hidden size
    R = 4                      # rain-forecast features
    O = 4                      # decoder.output_size
    T = 12                     # target_len (module default)

    key = jax.random.PRNGKey(0)
    ks = jax.random.split(key, 12)

    def init(k, shape, scale=0.1):
        return (scale * jax.random.normal(k, shape)).astype(jnp.float32)

    params = {
        # encoder LSTM (input_size=E, hidden=H)
        "w_ih_e": init(ks[0], (4 * H, E)),
        "w_hh_e": init(ks[1], (4 * H, H)),
        "b_ih_e": init(ks[2], (4 * H,)),
        "b_hh_e": init(ks[3], (4 * H,)),
        # decoder LSTM (input_size = O + R, hidden=H)
        "w_ih_d": init(ks[4], (4 * H, O + R)),
        "w_hh_d": init(ks[5], (4 * H, H)),
        "b_ih_d": init(ks[6], (4 * H,)),
        "b_hh_d": init(ks[7], (4 * H,)),
        # decoder FC head (H -> O)
        "w_fc": init(ks[8], (O, H)),
        "b_fc": init(ks[9], (O,)),
    }

    src = init(ks[10], (B, S, E), scale=1.0)
    rain_forecasts = init(ks[11], (B, T, R), scale=1.0)

    out = hydro_seq2seq(src, rain_forecasts, params, target_len=T)
    out = jax.block_until_ready(out)

    ref = _reference(src, rain_forecasts, params, target_len=T)
    assert out.shape == (B, T, O), out.shape
    assert jnp.allclose(out, ref, atol=1e-4, rtol=1e-4), \
        float(jnp.max(jnp.abs(out - ref)))

    print("KERNEL_OK")
</pallas_src>

<mosaic_0001>
module attributes {stable_mosaic.version = 11 : i64} {
  func.func @_seq2seq_kernel(%arg0: memref<64x8xf32, #tpu.memory_space<vmem>>, %arg1: memref<96x8xf32, #tpu.memory_space<vmem>>, %arg2: memref<152x128xf32, #tpu.memory_space<vmem>>, %arg3: memref<96x128xf32, #tpu.memory_space<vmem>>) attributes {dimension_semantics = [], scalar_prefetch = 0 : i64, scratch_operands = 0 : i64, tpu.core_type = #tpu.core_type<tc>} {
    %c0 = arith.constant 0 : index
    %c0_0 = arith.constant 0 : index
    %0 = vector.load %arg2[%c0, %c0_0] : memref<152x128xf32, #tpu.memory_space<vmem>>, vector<8x128xf32>
    %c8 = arith.constant 8 : index
    %c0_1 = arith.constant 0 : index
    %1 = vector.load %arg2[%c8, %c0_1] : memref<152x128xf32, #tpu.memory_space<vmem>>, vector<32x128xf32>
    %c40 = arith.constant 40 : index
    %c0_2 = arith.constant 0 : index
    %2 = vector.load %arg2[%c40, %c0_2] : memref<152x128xf32, #tpu.memory_space<vmem>>, vector<8x128xf32>
    %c48 = arith.constant 48 : index
    %c0_3 = arith.constant 0 : index
    %3 = vector.load %arg2[%c48, %c0_3] : memref<152x128xf32, #tpu.memory_space<vmem>>, vector<32x128xf32>
    %c80 = arith.constant 80 : index
    %c0_4 = arith.constant 0 : index
    %4 = vector.load %arg2[%c80, %c0_4] : memref<152x128xf32, #tpu.memory_space<vmem>>, vector<32x128xf32>
    %c112 = arith.constant 112 : index
    %c0_5 = arith.constant 0 : index
    %5 = vector.load %arg2[%c112, %c0_5] : memref<152x128xf32, #tpu.memory_space<vmem>>, vector<32x128xf32>
    %c144 = arith.constant 144 : index
    %c0_6 = arith.constant 0 : index
    %6 = vector.load %arg2[%c144, %c0_6] : memref<152x128xf32, #tpu.memory_space<vmem>>, vector<1x128xf32>
    %c145 = arith.constant 145 : index
    %c0_7 = arith.constant 0 : index
    %7 = vector.load %arg2[%c145, %c0_7] : memref<152x128xf32, #tpu.memory_space<vmem>>, vector<1x128xf32>
    %c146 = arith.constant 146 : index
    %c0_8 = arith.constant 0 : index
    %8 = vector.load %arg2[%c146, %c0_8] : memref<152x128xf32, #tpu.memory_space<vmem>>, vector<1x128xf32>
    %c147 = arith.constant 147 : index
    %c0_9 = arith.constant 0 : index
    %9 = vector.load %arg2[%c147, %c0_9] : memref<152x128xf32, #tpu.memory_space<vmem>>, vector<1x128xf32>
    %c0_10 = arith.constant 0 : index
    %c0_11 = arith.constant 0 : index
    %10 = vector.load %arg0[%c0_10, %c0_11] : memref<64x8xf32, #tpu.memory_space<vmem>>, vector<64x8xf32>
    %cst = arith.constant dense<0.000000e+00> : vector<64x128xf32>
    %11 = tpu.matmul %10, %0, %cst {dimension_numbers = #tpu.dot_dimension_numbers<[1], [0], [0], [1], [0, 0, 1, 1], [], []>} : vector<64x8xf32>, vector<8x128xf32>, vector<64x128xf32> -> vector<64x128xf32>
    %12 = vector.broadcast %6 : vector<1x128xf32> to vector<64x128xf32>
    %13 = arith.addf %11, %12 : vector<64x128xf32>
    %c0_12 = arith.constant 0 : index
    %c0_13 = arith.constant 0 : index
    %14 = vector.load %arg1[%c0_12, %c0_13] : memref<96x8xf32, #tpu.memory_space<vmem>>, vector<96x8xf32>
    %cst_14 = arith.constant dense<0.000000e+00> : vector<96x128xf32>
    %15 = tpu.matmul %14, %2, %cst_14 {dimension_numbers = #tpu.dot_dimension_numbers<[1], [0], [0], [1], [0, 0, 1, 1], [], []>} : vector<96x8xf32>, vector<8x128xf32>, vector<96x128xf32> -> vector<96x128xf32>
    %16 = vector.broadcast %7 : vector<1x128xf32> to vector<96x128xf32>
    %17 = arith.addf %15, %16 : vector<96x128xf32>
    %cst_15 = arith.constant 0.000000e+00 : f32
    %18 = vector.broadcast %cst_15 : f32 to vector<8x32xf32>
    %cst_16 = arith.constant 0.000000e+00 : f32
    %19 = vector.broadcast %cst_16 : f32 to vector<8x32xf32>
    %20 = vector.extract_strided_slice %13 {offsets = [0, 0], sizes = [8, 128], strides = [1, 1]} : vector<64x128xf32> to vector<8x128xf32>
    %cst_17 = arith.constant dense<0.000000e+00> : vector<8x128xf32>
    %21 = tpu.matmul %18, %1, %cst_17 {dimension_numbers = #tpu.dot_dimension_numbers<[1], [0], [0], [1], [0, 0, 1, 1], [], []>} : vector<8x32xf32>, vector<32x128xf32>, vector<8x128xf32> -> vector<8x128xf32>
    %22 = arith.addf %20, %21 : vector<8x128xf32>
    %23 = arith.negf %22 : vector<8x128xf32>
    %24 = math.exp %23 : vector<8x128xf32>
    %cst_18 = arith.constant 1.000000e+00 : f32
    %25 = vector.broadcast %cst_18 : f32 to vector<8x128xf32>
    %26 = arith.addf %25, %24 : vector<8x128xf32>
    %27 = arith.divf %25, %26 : vector<8x128xf32>
    %28 = math.tanh %22 : vector<8x128xf32>
    %29 = vector.extract_strided_slice %27 {offsets = [0, 0], sizes = [8, 32], strides = [1, 1]} : vector<8x128xf32> to vector<8x32xf32>
    %30 = vector.extract_strided_slice %27 {offsets = [0, 32], sizes = [8, 32], strides = [1, 1]} : vector<8x128xf32> to vector<8x32xf32>
    %31 = vector.extract_strided_slice %28 {offsets = [0, 64], sizes = [8, 32], strides = [1, 1]} : vector<8x128xf32> to vector<8x32xf32>
    %32 = vector.extract_strided_slice %27 {offsets = [0, 96], sizes = [8, 32], strides = [1, 1]} : vector<8x128xf32> to vector<8x32xf32>
    %33 = arith.mulf %30, %19 : vector<8x32xf32>
    %34 = arith.mulf %29, %31 : vector<8x32xf32>
    %35 = arith.addf %33, %34 : vector<8x32xf32>
    %36 = math.tanh %35 : vector<8x32xf32>
    %37 = arith.mulf %32, %36 : vector<8x32xf32>
    %38 = vector.extract_strided_slice %13 {offsets = [8, 0], sizes = [8, 128], strides = [1, 1]} : vector<64x128xf32> to vector<8x128xf32>
    %cst_19 = arith.constant dense<0.000000e+00> : vector<8x128xf32>
    %39 = tpu.matmul %37, %1, %cst_19 {dimension_numbers = #tpu.dot_dimension_numbers<[1], [0], [0], [1], [0, 0, 1, 1], [], []>} : vector<8x32xf32>, vector<32x128xf32>, vector<8x128xf32> -> vector<8x128xf32>
    %40 = arith.addf %38, %39 : vector<8x128xf32>
    %41 = arith.negf %40 : vector<8x128xf32>
    %42 = math.exp %41 : vector<8x128xf32>
    %cst_20 = arith.constant 1.000000e+00 : f32
    %43 = vector.broadcast %cst_20 : f32 to vector<8x128xf32>
    %44 = arith.addf %43, %42 : vector<8x128xf32>
    %45 = arith.divf %43, %44 : vector<8x128xf32>
    %46 = math.tanh %40 : vector<8x128xf32>
    %47 = vector.extract_strided_slice %45 {offsets = [0, 0], sizes = [8, 32], strides = [1, 1]} : vector<8x128xf32> to vector<8x32xf32>
    %48 = vector.extract_strided_slice %45 {offsets = [0, 32], sizes = [8, 32], strides = [1, 1]} : vector<8x128xf32> to vector<8x32xf32>
    %49 = vector.extract_strided_slice %46 {offsets = [0, 64], sizes = [8, 32], strides = [1, 1]} : vector<8x128xf32> to vector<8x32xf32>
    %50 = vector.extract_strided_slice %45 {offsets = [0, 96], sizes = [8, 32], strides = [1, 1]} : vector<8x128xf32> to vector<8x32xf32>
    %51 = arith.mulf %48, %35 : vector<8x32xf32>
    %52 = arith.mulf %47, %49 : vector<8x32xf32>
    %53 = arith.addf %51, %52 : vector<8x32xf32>
    %54 = math.tanh %53 : vector<8x32xf32>
    %55 = arith.mulf %50, %54 : vector<8x32xf32>
    %56 = vector.extract_strided_slice %13 {offsets = [16, 0], sizes = [8, 128], strides = [1, 1]} : vector<64x128xf32> to vector<8x128xf32>
    %cst_21 = arith.constant dense<0.000000e+00> : vector<8x128xf32>
    %57 = tpu.matmul %55, %1, %cst_21 {dimension_numbers = #tpu.dot_dimension_numbers<[1], [0], [0], [1], [0, 0, 1, 1], [], []>} : vector<8x32xf32>, vector<32x128xf32>, vector<8x128xf32> -> vector<8x128xf32>
    %58 = arith.addf %56, %57 : vector<8x128xf32>
    %59 = arith.negf %58 : vector<8x128xf32>
    %60 = math.exp %59 : vector<8x128xf32>
    %cst_22 = arith.constant 1.000000e+00 : f32
    %61 = vector.broadcast %cst_22 : f32 to vector<8x128xf32>
    %62 = arith.addf %61, %60 : vector<8x128xf32>
    %63 = arith.divf %61, %62 : vector<8x128xf32>
    %64 = math.tanh %58 : vector<8x128xf32>
    %65 = vector.extract_strided_slice %63 {offsets = [0, 0], sizes = [8, 32], strides = [1, 1]} : vector<8x128xf32> to vector<8x32xf32>
    %66 = vector.extract_strided_slice %63 {offsets = [0, 32], sizes = [8, 32], strides = [1, 1]} : vector<8x128xf32> to vector<8x32xf32>
    %67 = vector.extract_strided_slice %64 {offsets = [0, 64], sizes = [8, 32], strides = [1, 1]} : vector<8x128xf32> to vector<8x32xf32>
    %68 = vector.extract_strided_slice %63 {offsets = [0, 96], sizes = [8, 32], strides = [1, 1]} : vector<8x128xf32> to vector<8x32xf32>
    %69 = arith.mulf %66, %53 : vector<8x32xf32>
    %70 = arith.mulf %65, %67 : vector<8x32xf32>
    %71 = arith.addf %69, %70 : vector<8x32xf32>
    %72 = math.tanh %71 : vector<8x32xf32>
    %73 = arith.mulf %68, %72 : vector<8x32xf32>
    %74 = vector.extract_strided_slice %13 {offsets = [24, 0], sizes = [8, 128], strides = [1, 1]} : vector<64x128xf32> to vector<8x128xf32>
    %cst_23 = arith.constant dense<0.000000e+00> : vector<8x128xf32>
    %75 = tpu.matmul %73, %1, %cst_23 {dimension_numbers = #tpu.dot_dimension_numbers<[1], [0], [0], [1], [0, 0, 1, 1], [], []>} : vector<8x32xf32>, vector<32x128xf32>, vector<8x128xf32> -> vector<8x128xf32>
    %76 = arith.addf %74, %75 : vector<8x128xf32>
    %77 = arith.negf %76 : vector<8x128xf32>
    %78 = math.exp %77 : vector<8x128xf32>
    %cst_24 = arith.constant 1.000000e+00 : f32
    %79 = vector.broadcast %cst_24 : f32 to vector<8x128xf32>
    %80 = arith.addf %79, %78 : vector<8x128xf32>
    %81 = arith.divf %79, %80 : vector<8x128xf32>
    %82 = math.tanh %76 : vector<8x128xf32>
    %83 = vector.extract_strided_slice %81 {offsets = [0, 0], sizes = [8, 32], strides = [1, 1]} : vector<8x128xf32> to vector<8x32xf32>
    %84 = vector.extract_strided_slice %81 {offsets = [0, 32], sizes = [8, 32], strides = [1, 1]} : vector<8x128xf32> to vector<8x32xf32>
    %85 = vector.extract_strided_slice %82 {offsets = [0, 64], sizes = [8, 32], strides = [1, 1]} : vector<8x128xf32> to vector<8x32xf32>
    %86 = vector.extract_strided_slice %81 {offsets = [0, 96], sizes = [8, 32], strides = [1, 1]} : vector<8x128xf32> to vector<8x32xf32>
    %87 = arith.mulf %84, %71 : vector<8x32xf32>
    %88 = arith.mulf %83, %85 : vector<8x32xf32>
    %89 = arith.addf %87, %88 : vector<8x32xf32>
    %90 = math.tanh %89 : vector<8x32xf32>
    %91 = arith.mulf %86, %90 : vector<8x32xf32>
    %92 = vector.extract_strided_slice %13 {offsets = [32, 0], sizes = [8, 128], strides = [1, 1]} : vector<64x128xf32> to vector<8x128xf32>
    %cst_25 = arith.constant dense<0.000000e+00> : vector<8x128xf32>
    %93 = tpu.matmul %91, %1, %cst_25 {dimension_numbers = #tpu.dot_dimension_numbers<[1], [0], [0], [1], [0, 0, 1, 1], [], []>} : vector<8x32xf32>, vector<32x128xf32>, vector<8x128xf32> -> vector<8x128xf32>
    %94 = arith.addf %92, %93 : vector<8x128xf32>
    %95 = arith.negf %94 : vector<8x128xf32>
    %96 = math.exp %95 : vector<8x128xf32>
    %cst_26 = arith.constant 1.000000e+00 : f32
    %97 = vector.broadcast %cst_26 : f32 to vector<8x128xf32>
    %98 = arith.addf %97, %96 : vector<8x128xf32>
    %99 = arith.divf %97, %98 : vector<8x128xf32>
    %100 = math.tanh %94 : vector<8x128xf32>
    %101 = vector.extract_strided_slice %99 {offsets = [0, 0], sizes = [8, 32], strides = [1, 1]} : vector<8x128xf32> to vector<8x32xf32>
    %102 = vector.extract_strided_slice %99 {offsets = [0, 32], sizes = [8, 32], strides = [1, 1]} : vector<8x128xf32> to vector<8x32xf32>
    %103 = vector.extract_strided_slice %100 {offsets = [0, 64], sizes = [8, 32], strides = [1, 1]} : vector<8x128xf32> to vector<8x32xf32>
    %104 = vector.extract_strided_slice %99 {offsets = [0, 96], sizes = [8, 32], strides = [1, 1]} : vector<8x128xf32> to vector<8x32xf32>
    %105 = arith.mulf %102, %89 : vector<8x32xf32>
    %106 = arith.mulf %101, %103 : vector<8x32xf32>
    %107 = arith.addf %105, %106 : vector<8x32xf32>
    %108 = math.tanh %107 : vector<8x32xf32>
    %109 = arith.mulf %104, %108 : vector<8x32xf32>
    %110 = vector.extract_strided_slice %13 {offsets = [40, 0], sizes = [8, 128], strides = [1, 1]} : vector<64x128xf32> to vector<8x128xf32>
    %cst_27 = arith.constant dense<0.000000e+00> : vector<8x128xf32>
    %111 = tpu.matmul %109, %1, %cst_27 {dimension_numbers = #tpu.dot_dimension_numbers<[1], [0], [0], [1], [0, 0, 1, 1], [], []>} : vector<8x32xf32>, vector<32x128xf32>, vector<8x128xf32> -> vector<8x128xf32>
    %112 = arith.addf %110, %111 : vector<8x128xf32>
    %113 = arith.negf %112 : vector<8x128xf32>
    %114 = math.exp %113 : vector<8x128xf32>
    %cst_28 = arith.constant 1.000000e+00 : f32
    %115 = vector.broadcast %cst_28 : f32 to vector<8x128xf32>
    %116 = arith.addf %115, %114 : vector<8x128xf32>
    %117 = arith.divf %115, %116 : vector<8x128xf32>
    %118 = math.tanh %112 : vector<8x128xf32>
    %119 = vector.extract_strided_slice %117 {offsets = [0, 0], sizes = [8, 32], strides = [1, 1]} : vector<8x128xf32> to vector<8x32xf32>
    %120 = vector.extract_strided_slice %117 {offsets = [0, 32], sizes = [8, 32], strides = [1, 1]} : vector<8x128xf32> to vector<8x32xf32>
    %121 = vector.extract_strided_slice %118 {offsets = [0, 64], sizes = [8, 32], strides = [1, 1]} : vector<8x128xf32> to vector<8x32xf32>
    %122 = vector.extract_strided_slice %117 {offsets = [0, 96], sizes = [8, 32], strides = [1, 1]} : vector<8x128xf32> to vector<8x32xf32>
    %123 = arith.mulf %120, %107 : vector<8x32xf32>
    %124 = arith.mulf %119, %121 : vector<8x32xf32>
    %125 = arith.addf %123, %124 : vector<8x32xf32>
    %126 = math.tanh %125 : vector<8x32xf32>
    %127 = arith.mulf %122, %126 : vector<8x32xf32>
    %128 = vector.extract_strided_slice %13 {offsets = [48, 0], sizes = [8, 128], strides = [1, 1]} : vector<64x128xf32> to vector<8x128xf32>
    %cst_29 = arith.constant dense<0.000000e+00> : vector<8x128xf32>
    %129 = tpu.matmul %127, %1, %cst_29 {dimension_numbers = #tpu.dot_dimension_numbers<[1], [0], [0], [1], [0, 0, 1, 1], [], []>} : vector<8x32xf32>, vector<32x128xf32>, vector<8x128xf32> -> vector<8x128xf32>
    %130 = arith.addf %128, %129 : vector<8x128xf32>
    %131 = arith.negf %130 : vector<8x128xf32>
    %132 = math.exp %131 : vector<8x128xf32>
    %cst_30 = arith.constant 1.000000e+00 : f32
    %133 = vector.broadcast %cst_30 : f32 to vector<8x128xf32>
    %134 = arith.addf %133, %132 : vector<8x128xf32>
    %135 = arith.divf %133, %134 : vector<8x128xf32>
    %136 = math.tanh %130 : vector<8x128xf32>
    %137 = vector.extract_strided_slice %135 {offsets = [0, 0], sizes = [8, 32], strides = [1, 1]} : vector<8x128xf32> to vector<8x32xf32>
    %138 = vector.extract_strided_slice %135 {offsets = [0, 32], sizes = [8, 32], strides = [1, 1]} : vector<8x128xf32> to vector<8x32xf32>
    %139 = vector.extract_strided_slice %136 {offsets = [0, 64], sizes = [8, 32], strides = [1, 1]} : vector<8x128xf32> to vector<8x32xf32>
    %140 = vector.extract_strided_slice %135 {offsets = [0, 96], sizes = [8, 32], strides = [1, 1]} : vector<8x128xf32> to vector<8x32xf32>
    %141 = arith.mulf %138, %125 : vector<8x32xf32>
    %142 = arith.mulf %137, %139 : vector<8x32xf32>
    %143 = arith.addf %141, %142 : vector<8x32xf32>
    %144 = math.tanh %143 : vector<8x32xf32>
    %145 = arith.mulf %140, %144 : vector<8x32xf32>
    %146 = vector.extract_strided_slice %13 {offsets = [56, 0], sizes = [8, 128], strides = [1, 1]} : vector<64x128xf32> to vector<8x128xf32>
    %cst_31 = arith.constant dense<0.000000e+00> : vector<8x128xf32>
    %147 = tpu.matmul %145, %1, %cst_31 {dimension_numbers = #tpu.dot_dimension_numbers<[1], [0], [0], [1], [0, 0, 1, 1], [], []>} : vector<8x32xf32>, vector<32x128xf32>, vector<8x128xf32> -> vector<8x128xf32>
    %148 = arith.addf %146, %147 : vector<8x128xf32>
    %149 = arith.negf %148 : vector<8x128xf32>
    %150 = math.exp %149 : vector<8x128xf32>
    %cst_32 = arith.constant 1.000000e+00 : f32
    %151 = vector.broadcast %cst_32 : f32 to vector<8x128xf32>
    %152 = arith.addf %151, %150 : vector<8x128xf32>
    %153 = arith.divf %151, %152 : vector<8x128xf32>
    %154 = math.tanh %148 : vector<8x128xf32>
    %155 = vector.extract_strided_slice %153 {offsets = [0, 0], sizes = [8, 32], strides = [1, 1]} : vector<8x128xf32> to vector<8x32xf32>
    %156 = vector.extract_strided_slice %153 {offsets = [0, 32], sizes = [8, 32], strides = [1, 1]} : vector<8x128xf32> to vector<8x32xf32>
    %157 = vector.extract_strided_slice %154 {offsets = [0, 64], sizes = [8, 32], strides = [1, 1]} : vector<8x128xf32> to vector<8x32xf32>
    %158 = vector.extract_strided_slice %153 {offsets = [0, 96], sizes = [8, 32], strides = [1, 1]} : vector<8x128xf32> to vector<8x32xf32>
    %159 = arith.mulf %156, %143 : vector<8x32xf32>
    %160 = arith.mulf %155, %157 : vector<8x32xf32>
    %161 = arith.addf %159, %160 : vector<8x32xf32>
    %162 = math.tanh %161 : vector<8x32xf32>
    %163 = arith.mulf %158, %162 : vector<8x32xf32>
    %164 = vector.extract_strided_slice %17 {offsets = [0, 0], sizes = [8, 128], strides = [1, 1]} : vector<96x128xf32> to vector<8x128xf32>
    %165 = vector.broadcast %8 : vector<1x128xf32> to vector<8x128xf32>
    %166 = arith.addf %164, %165 : vector<8x128xf32>
    %cst_33 = arith.constant dense<0.000000e+00> : vector<8x128xf32>
    %167 = tpu.matmul %163, %3, %cst_33 {dimension_numbers = #tpu.dot_dimension_numbers<[1], [0], [0], [1], [0, 0, 1, 1], [], []>} : vector<8x32xf32>, vector<32x128xf32>, vector<8x128xf32> -> vector<8x128xf32>
    %168 = arith.addf %166, %167 : vector<8x128xf32>
    %169 = arith.negf %168 : vector<8x128xf32>
    %170 = math.exp %169 : vector<8x128xf32>
    %cst_34 = arith.constant 1.000000e+00 : f32
    %171 = vector.broadcast %cst_34 : f32 to vector<8x128xf32>
    %172 = arith.addf %171, %170 : vector<8x128xf32>
    %173 = arith.divf %171, %172 : vector<8x128xf32>
    %174 = math.tanh %168 : vector<8x128xf32>
    %175 = vector.extract_strided_slice %173 {offsets = [0, 0], sizes = [8, 32], strides = [1, 1]} : vector<8x128xf32> to vector<8x32xf32>
    %176 = vector.extract_strided_slice %173 {offsets = [0, 32], sizes = [8, 32], strides = [1, 1]} : vector<8x128xf32> to vector<8x32xf32>
    %177 = vector.extract_strided_slice %174 {offsets = [0, 64], sizes = [8, 32], strides = [1, 1]} : vector<8x128xf32> to vector<8x32xf32>
    %178 = vector.extract_strided_slice %173 {offsets = [0, 96], sizes = [8, 32], strides = [1, 1]} : vector<8x128xf32> to vector<8x32xf32>
    %179 = arith.mulf %176, %161 : vector<8x32xf32>
    %180 = arith.mulf %175, %177 : vector<8x32xf32>
    %181 = arith.addf %179, %180 : vector<8x32xf32>
    %182 = math.tanh %181 : vector<8x32xf32>
    %183 = arith.mulf %178, %182 : vector<8x32xf32>
    %184 = vector.extract_strided_slice %17 {offsets = [8, 0], sizes = [8, 128], strides = [1, 1]} : vector<96x128xf32> to vector<8x128xf32>
    %cst_35 = arith.constant dense<0.000000e+00> : vector<8x128xf32>
    %185 = tpu.matmul %183, %4, %cst_35 {dimension_numbers = #tpu.dot_dimension_numbers<[1], [0], [0], [1], [0, 0, 1, 1], [], []>} : vector<8x32xf32>, vector<32x128xf32>, vector<8x128xf32> -> vector<8x128xf32>
    %186 = arith.addf %184, %185 : vector<8x128xf32>
    %187 = arith.negf %186 : vector<8x128xf32>
    %188 = math.exp %187 : vector<8x128xf32>
    %cst_36 = arith.constant 1.000000e+00 : f32
    %189 = vector.broadcast %cst_36 : f32 to vector<8x128xf32>
    %190 = arith.addf %189, %188 : vector<8x128xf32>
    %191 = arith.divf %189, %190 : vector<8x128xf32>
    %192 = math.tanh %186 : vector<8x128xf32>
    %193 = vector.extract_strided_slice %191 {offsets = [0, 0], sizes = [8, 32], strides = [1, 1]} : vector<8x128xf32> to vector<8x32xf32>
    %194 = vector.extract_strided_slice %191 {offsets = [0, 32], sizes = [8, 32], strides = [1, 1]} : vector<8x128xf32> to vector<8x32xf32>
    %195 = vector.extract_strided_slice %192 {offsets = [0, 64], sizes = [8, 32], strides = [1, 1]} : vector<8x128xf32> to vector<8x32xf32>
    %196 = vector.extract_strided_slice %191 {offsets = [0, 96], sizes = [8, 32], strides = [1, 1]} : vector<8x128xf32> to vector<8x32xf32>
    %197 = arith.mulf %194, %181 : vector<8x32xf32>
    %198 = arith.mulf %193, %195 : vector<8x32xf32>
    %199 = arith.addf %197, %198 : vector<8x32xf32>
    %200 = math.tanh %199 : vector<8x32xf32>
    %201 = arith.mulf %196, %200 : vector<8x32xf32>
    %202 = vector.extract_strided_slice %17 {offsets = [16, 0], sizes = [8, 128], strides = [1, 1]} : vector<96x128xf32> to vector<8x128xf32>
    %cst_37 = arith.constant dense<0.000000e+00> : vector<8x128xf32>
    %203 = tpu.matmul %201, %4, %cst_37 {dimension_numbers = #tpu.dot_dimension_numbers<[1], [0], [0], [1], [0, 0, 1, 1], [], []>} : vector<8x32xf32>, vector<32x128xf32>, vector<8x128xf32> -> vector<8x128xf32>
    %204 = arith.addf %202, %203 : vector<8x128xf32>
    %205 = arith.negf %204 : vector<8x128xf32>
    %206 = math.exp %205 : vector<8x128xf32>
    %cst_38 = arith.constant 1.000000e+00 : f32
    %207 = vector.broadcast %cst_38 : f32 to vector<8x128xf32>
    %208 = arith.addf %207, %206 : vector<8x128xf32>
    %209 = arith.divf %207, %208 : vector<8x128xf32>
    %210 = math.tanh %204 : vector<8x128xf32>
    %211 = vector.extract_strided_slice %209 {offsets = [0, 0], sizes = [8, 32], strides = [1, 1]} : vector<8x128xf32> to vector<8x32xf32>
    %212 = vector.extract_strided_slice %209 {offsets = [0, 32], sizes = [8, 32], strides = [1, 1]} : vector<8x128xf32> to vector<8x32xf32>
    %213 = vector.extract_strided_slice %210 {offsets = [0, 64], sizes = [8, 32], strides = [1, 1]} : vector<8x128xf32> to vector<8x32xf32>
    %214 = vector.extract_strided_slice %209 {offsets = [0, 96], sizes = [8, 32], strides = [1, 1]} : vector<8x128xf32> to vector<8x32xf32>
    %215 = arith.mulf %212, %199 : vector<8x32xf32>
    %216 = arith.mulf %211, %213 : vector<8x32xf32>
    %217 = arith.addf %215, %216 : vector<8x32xf32>
    %218 = math.tanh %217 : vector<8x32xf32>
    %219 = arith.mulf %214, %218 : vector<8x32xf32>
    %220 = vector.extract_strided_slice %17 {offsets = [24, 0], sizes = [8, 128], strides = [1, 1]} : vector<96x128xf32> to vector<8x128xf32>
    %cst_39 = arith.constant dense<0.000000e+00> : vector<8x128xf32>
    %221 = tpu.matmul %219, %4, %cst_39 {dimension_numbers = #tpu.dot_dimension_numbers<[1], [0], [0], [1], [0, 0, 1, 1], [], []>} : vector<8x32xf32>, vector<32x128xf32>, vector<8x128xf32> -> vector<8x128xf32>
    %222 = arith.addf %220, %221 : vector<8x128xf32>
    %223 = arith.negf %222 : vector<8x128xf32>
    %224 = math.exp %223 : vector<8x128xf32>
    %cst_40 = arith.constant 1.000000e+00 : f32
    %225 = vector.broadcast %cst_40 : f32 to vector<8x128xf32>
    %226 = arith.addf %225, %224 : vector<8x128xf32>
    %227 = arith.divf %225, %226 : vector<8x128xf32>
    %228 = math.tanh %222 : vector<8x128xf32>
    %229 = vector.extract_strided_slice %227 {offsets = [0, 0], sizes = [8, 32], strides = [1, 1]} : vector<8x128xf32> to vector<8x32xf32>
    %230 = vector.extract_strided_slice %227 {offsets = [0, 32], sizes = [8, 32], strides = [1, 1]} : vector<8x128xf32> to vector<8x32xf32>
    %231 = vector.extract_strided_slice %228 {offsets = [0, 64], sizes = [8, 32], strides = [1, 1]} : vector<8x128xf32> to vector<8x32xf32>
    %232 = vector.extract_strided_slice %227 {offsets = [0, 96], sizes = [8, 32], strides = [1, 1]} : vector<8x128xf32> to vector<8x32xf32>
    %233 = arith.mulf %230, %217 : vector<8x32xf32>
    %234 = arith.mulf %229, %231 : vector<8x32xf32>
    %235 = arith.addf %233, %234 : vector<8x32xf32>
    %236 = math.tanh %235 : vector<8x32xf32>
    %237 = arith.mulf %232, %236 : vector<8x32xf32>
    %238 = vector.extract_strided_slice %17 {offsets = [32, 0], sizes = [8, 128], strides = [1, 1]} : vector<96x128xf32> to vector<8x128xf32>
    %cst_41 = arith.constant dense<0.000000e+00> : vector<8x128xf32>
    %239 = tpu.matmul %237, %4, %cst_41 {dimension_numbers = #tpu.dot_dimension_numbers<[1], [0], [0], [1], [0, 0, 1, 1], [], []>} : vector<8x32xf32>, vector<32x128xf32>, vector<8x128xf32> -> vector<8x128xf32>
    %240 = arith.addf %238, %239 : vector<8x128xf32>
    %241 = arith.negf %240 : vector<8x128xf32>
    %242 = math.exp %241 : vector<8x128xf32>
    %cst_42 = arith.constant 1.000000e+00 : f32
    %243 = vector.broadcast %cst_42 : f32 to vector<8x128xf32>
    %244 = arith.addf %243, %242 : vector<8x128xf32>
    %245 = arith.divf %243, %244 : vector<8x128xf32>
    %246 = math.tanh %240 : vector<8x128xf32>
    %247 = vector.extract_strided_slice %245 {offsets = [0, 0], sizes = [8, 32], strides = [1, 1]} : vector<8x128xf32> to vector<8x32xf32>
    %248 = vector.extract_strided_slice %245 {offsets = [0, 32], sizes = [8, 32], strides = [1, 1]} : vector<8x128xf32> to vector<8x32xf32>
    %249 = vector.extract_strided_slice %246 {offsets = [0, 64], sizes = [8, 32], strides = [1, 1]} : vector<8x128xf32> to vector<8x32xf32>
    %250 = vector.extract_strided_slice %245 {offsets = [0, 96], sizes = [8, 32], strides = [1, 1]} : vector<8x128xf32> to vector<8x32xf32>
    %251 = arith.mulf %248, %235 : vector<8x32xf32>
    %252 = arith.mulf %247, %249 : vector<8x32xf32>
    %253 = arith.addf %251, %252 : vector<8x32xf32>
    %254 = math.tanh %253 : vector<8x32xf32>
    %255 = arith.mulf %250, %254 : vector<8x32xf32>
    %256 = vector.extract_strided_slice %17 {offsets = [40, 0], sizes = [8, 128], strides = [1, 1]} : vector<96x128xf32> to vector<8x128xf32>
    %cst_43 = arith.constant dense<0.000000e+00> : vector<8x128xf32>
    %257 = tpu.matmul %255, %4, %cst_43 {dimension_numbers = #tpu.dot_dimension_numbers<[1], [0], [0], [1], [0, 0, 1, 1], [], []>} : vector<8x32xf32>, vector<32x128xf32>, vector<8x128xf32> -> vector<8x128xf32>
    %258 = arith.addf %256, %257 : vector<8x128xf32>
    %259 = arith.negf %258 : vector<8x128xf32>
    %260 = math.exp %259 : vector<8x128xf32>
    %cst_44 = arith.constant 1.000000e+00 : f32
    %261 = vector.broadcast %cst_44 : f32 to vector<8x128xf32>
    %262 = arith.addf %261, %260 : vector<8x128xf32>
    %263 = arith.divf %261, %262 : vector<8x128xf32>
    %264 = math.tanh %258 : vector<8x128xf32>
    %265 = vector.extract_strided_slice %263 {offsets = [0, 0], sizes = [8, 32], strides = [1, 1]} : vector<8x128xf32> to vector<8x32xf32>
    %266 = vector.extract_strided_slice %263 {offsets = [0, 32], sizes = [8, 32], strides = [1, 1]} : vector<8x128xf32> to vector<8x32xf32>
    %267 = vector.extract_strided_slice %264 {offsets = [0, 64], sizes = [8, 32], strides = [1, 1]} : vector<8x128xf32> to vector<8x32xf32>
    %268 = vector.extract_strided_slice %263 {offsets = [0, 96], sizes = [8, 32], strides = [1, 1]} : vector<8x128xf32> to vector<8x32xf32>
    %269 = arith.mulf %266, %253 : vector<8x32xf32>
    %270 = arith.mulf %265, %267 : vector<8x32xf32>
    %271 = arith.addf %269, %270 : vector<8x32xf32>
    %272 = math.tanh %271 : vector<8x32xf32>
    %273 = arith.mulf %268, %272 : vector<8x32xf32>
    %274 = vector.extract_strided_slice %17 {offsets = [48, 0], sizes = [8, 128], strides = [1, 1]} : vector<96x128xf32> to vector<8x128xf32>
    %cst_45 = arith.constant dense<0.000000e+00> : vector<8x128xf32>
    %275 = tpu.matmul %273, %4, %cst_45 {dimension_numbers = #tpu.dot_dimension_numbers<[1], [0], [0], [1], [0, 0, 1, 1], [], []>} : vector<8x32xf32>, vector<32x128xf32>, vector<8x128xf32> -> vector<8x128xf32>
    %276 = arith.addf %274, %275 : vector<8x128xf32>
    %277 = arith.negf %276 : vector<8x128xf32>
    %278 = math.exp %277 : vector<8x128xf32>
    %cst_46 = arith.constant 1.000000e+00 : f32
    %279 = vector.broadcast %cst_46 : f32 to vector<8x128xf32>
    %280 = arith.addf %279, %278 : vector<8x128xf32>
    %281 = arith.divf %279, %280 : vector<8x128xf32>
    %282 = math.tanh %276 : vector<8x128xf32>
    %283 = vector.extract_strided_slice %281 {offsets = [0, 0], sizes = [8, 32], strides = [1, 1]} : vector<8x128xf32> to vector<8x32xf32>
    %284 = vector.extract_strided_slice %281 {offsets = [0, 32], sizes = [8, 32], strides = [1, 1]} : vector<8x128xf32> to vector<8x32xf32>
    %285 = vector.extract_strided_slice %282 {offsets = [0, 64], sizes = [8, 32], strides = [1, 1]} : vector<8x128xf32> to vector<8x32xf32>
    %286 = vector.extract_strided_slice %281 {offsets = [0, 96], sizes = [8, 32], strides = [1, 1]} : vector<8x128xf32> to vector<8x32xf32>
    %287 = arith.mulf %284, %271 : vector<8x32xf32>
    %288 = arith.mulf %283, %285 : vector<8x32xf32>
    %289 = arith.addf %287, %288 : vector<8x32xf32>
    %290 = math.tanh %289 : vector<8x32xf32>
    %291 = arith.mulf %286, %290 : vector<8x32xf32>
    %292 = vector.extract_strided_slice %17 {offsets = [56, 0], sizes = [8, 128], strides = [1, 1]} : vector<96x128xf32> to vector<8x128xf32>
    %cst_47 = arith.constant dense<0.000000e+00> : vector<8x128xf32>
    %293 = tpu.matmul %291, %4, %cst_47 {dimension_numbers = #tpu.dot_dimension_numbers<[1], [0], [0], [1], [0, 0, 1, 1], [], []>} : vector<8x32xf32>, vector<32x128xf32>, vector<8x128xf32> -> vector<8x128xf32>
    %294 = arith.addf %292, %293 : vector<8x128xf32>
    %295 = arith.negf %294 : vector<8x128xf32>
    %296 = math.exp %295 : vector<8x128xf32>
    %cst_48 = arith.constant 1.000000e+00 : f32
    %297 = vector.broadcast %cst_48 : f32 to vector<8x128xf32>
    %298 = arith.addf %297, %296 : vector<8x128xf32>
    %299 = arith.divf %297, %298 : vector<8x128xf32>
    %300 = math.tanh %294 : vector<8x128xf32>
    %301 = vector.extract_strided_slice %299 {offsets = [0, 0], sizes = [8, 32], strides = [1, 1]} : vector<8x128xf32> to vector<8x32xf32>
    %302 = vector.extract_strided_slice %299 {offsets = [0, 32], sizes = [8, 32], strides = [1, 1]} : vector<8x128xf32> to vector<8x32xf32>
    %303 = vector.extract_strided_slice %300 {offsets = [0, 64], sizes = [8, 32], strides = [1, 1]} : vector<8x128xf32> to vector<8x32xf32>
    %304 = vector.extract_strided_slice %299 {offsets = [0, 96], sizes = [8, 32], strides = [1, 1]} : vector<8x128xf32> to vector<8x32xf32>
    %305 = arith.mulf %302, %289 : vector<8x32xf32>
    %306 = arith.mulf %301, %303 : vector<8x32xf32>
    %307 = arith.addf %305, %306 : vector<8x32xf32>
    %308 = math.tanh %307 : vector<8x32xf32>
    %309 = arith.mulf %304, %308 : vector<8x32xf32>
    %310 = vector.extract_strided_slice %17 {offsets = [64, 0], sizes = [8, 128], strides = [1, 1]} : vector<96x128xf32> to vector<8x128xf32>
    %cst_49 = arith.constant dense<0.000000e+00> : vector<8x128xf32>
    %311 = tpu.matmul %309, %4, %cst_49 {dimension_numbers = #tpu.dot_dimension_numbers<[1], [0], [0], [1], [0, 0, 1, 1], [], []>} : vector<8x32xf32>, vector<32x128xf32>, vector<8x128xf32> -> vector<8x128xf32>
    %312 = arith.addf %310, %311 : vector<8x128xf32>
    %313 = arith.negf %312 : vector<8x128xf32>
    %314 = math.exp %313 : vector<8x128xf32>
    %cst_50 = arith.constant 1.000000e+00 : f32
    %315 = vector.broadcast %cst_50 : f32 to vector<8x128xf32>
    %316 = arith.addf %315, %314 : vector<8x128xf32>
    %317 = arith.divf %315, %316 : vector<8x128xf32>
    %318 = math.tanh %312 : vector<8x128xf32>
    %319 = vector.extract_strided_slice %317 {offsets = [0, 0], sizes = [8, 32], strides = [1, 1]} : vector<8x128xf32> to vector<8x32xf32>
    %320 = vector.extract_strided_slice %317 {offsets = [0, 32], sizes = [8, 32], strides = [1, 1]} : vector<8x128xf32> to vector<8x32xf32>
    %321 = vector.extract_strided_slice %318 {offsets = [0, 64], sizes = [8, 32], strides = [1, 1]} : vector<8x128xf32> to vector<8x32xf32>
    %322 = vector.extract_strided_slice %317 {offsets = [0, 96], sizes = [8, 32], strides = [1, 1]} : vector<8x128xf32> to vector<8x32xf32>
    %323 = arith.mulf %320, %307 : vector<8x32xf32>
    %324 = arith.mulf %319, %321 : vector<8x32xf32>
    %325 = arith.addf %323, %324 : vector<8x32xf32>
    %326 = math.tanh %325 : vector<8x32xf32>
    %327 = arith.mulf %322, %326 : vector<8x32xf32>
    %328 = vector.extract_strided_slice %17 {offsets = [72, 0], sizes = [8, 128], strides = [1, 1]} : vector<96x128xf32> to vector<8x128xf32>
    %cst_51 = arith.constant dense<0.000000e+00> : vector<8x128xf32>
    %329 = tpu.matmul %327, %4, %cst_51 {dimension_numbers = #tpu.dot_dimension_numbers<[1], [0], [0], [1], [0, 0, 1, 1], [], []>} : vector<8x32xf32>, vector<32x128xf32>, vector<8x128xf32> -> vector<8x128xf32>
    %330 = arith.addf %328, %329 : vector<8x128xf32>
    %331 = arith.negf %330 : vector<8x128xf32>
    %332 = math.exp %331 : vector<8x128xf32>
    %cst_52 = arith.constant 1.000000e+00 : f32
    %333 = vector.broadcast %cst_52 : f32 to vector<8x128xf32>
    %334 = arith.addf %333, %332 : vector<8x128xf32>
    %335 = arith.divf %333, %334 : vector<8x128xf32>
    %336 = math.tanh %330 : vector<8x128xf32>
    %337 = vector.extract_strided_slice %335 {offsets = [0, 0], sizes = [8, 32], strides = [1, 1]} : vector<8x128xf32> to vector<8x32xf32>
    %338 = vector.extract_strided_slice %335 {offsets = [0, 32], sizes = [8, 32], strides = [1, 1]} : vector<8x128xf32> to vector<8x32xf32>
    %339 = vector.extract_strided_slice %336 {offsets = [0, 64], sizes = [8, 32], strides = [1, 1]} : vector<8x128xf32> to vector<8x32xf32>
    %340 = vector.extract_strided_slice %335 {offsets = [0, 96], sizes = [8, 32], strides = [1, 1]} : vector<8x128xf32> to vector<8x32xf32>
    %341 = arith.mulf %338, %325 : vector<8x32xf32>
    %342 = arith.mulf %337, %339 : vector<8x32xf32>
    %343 = arith.addf %341, %342 : vector<8x32xf32>
    %344 = math.tanh %343 : vector<8x32xf32>
    %345 = arith.mulf %340, %344 : vector<8x32xf32>
    %346 = vector.extract_strided_slice %17 {offsets = [80, 0], sizes = [8, 128], strides = [1, 1]} : vector<96x128xf32> to vector<8x128xf32>
    %cst_53 = arith.constant dense<0.000000e+00> : vector<8x128xf32>
    %347 = tpu.matmul %345, %4, %cst_53 {dimension_numbers = #tpu.dot_dimension_numbers<[1], [0], [0], [1], [0, 0, 1, 1], [], []>} : vector<8x32xf32>, vector<32x128xf32>, vector<8x128xf32> -> vector<8x128xf32>
    %348 = arith.addf %346, %347 : vector<8x128xf32>
    %349 = arith.negf %348 : vector<8x128xf32>
    %350 = math.exp %349 : vector<8x128xf32>
    %cst_54 = arith.constant 1.000000e+00 : f32
    %351 = vector.broadcast %cst_54 : f32 to vector<8x128xf32>
    %352 = arith.addf %351, %350 : vector<8x128xf32>
    %353 = arith.divf %351, %352 : vector<8x128xf32>
    %354 = math.tanh %348 : vector<8x128xf32>
    %355 = vector.extract_strided_slice %353 {offsets = [0, 0], sizes = [8, 32], strides = [1, 1]} : vector<8x128xf32> to vector<8x32xf32>
    %356 = vector.extract_strided_slice %353 {offsets = [0, 32], sizes = [8, 32], strides = [1, 1]} : vector<8x128xf32> to vector<8x32xf32>
    %357 = vector.extract_strided_slice %354 {offsets = [0, 64], sizes = [8, 32], strides = [1, 1]} : vector<8x128xf32> to vector<8x32xf32>
    %358 = vector.extract_strided_slice %353 {offsets = [0, 96], sizes = [8, 32], strides = [1, 1]} : vector<8x128xf32> to vector<8x32xf32>
    %359 = arith.mulf %356, %343 : vector<8x32xf32>
    %360 = arith.mulf %355, %357 : vector<8x32xf32>
    %361 = arith.addf %359, %360 : vector<8x32xf32>
    %362 = math.tanh %361 : vector<8x32xf32>
    %363 = arith.mulf %358, %362 : vector<8x32xf32>
    %364 = vector.extract_strided_slice %17 {offsets = [88, 0], sizes = [8, 128], strides = [1, 1]} : vector<96x128xf32> to vector<8x128xf32>
    %cst_55 = arith.constant dense<0.000000e+00> : vector<8x128xf32>
    %365 = tpu.matmul %363, %4, %cst_55 {dimension_numbers = #tpu.dot_dimension_numbers<[1], [0], [0], [1], [0, 0, 1, 1], [], []>} : vector<8x32xf32>, vector<32x128xf32>, vector<8x128xf32> -> vector<8x128xf32>
    %366 = arith.addf %364, %365 : vector<8x128xf32>
    %367 = arith.negf %366 : vector<8x128xf32>
    %368 = math.exp %367 : vector<8x128xf32>
    %cst_56 = arith.constant 1.000000e+00 : f32
    %369 = vector.broadcast %cst_56 : f32 to vector<8x128xf32>
    %370 = arith.addf %369, %368 : vector<8x128xf32>
    %371 = arith.divf %369, %370 : vector<8x128xf32>
    %372 = math.tanh %366 : vector<8x128xf32>
    %373 = vector.extract_strided_slice %371 {offsets = [0, 0], sizes = [8, 32], strides = [1, 1]} : vector<8x128xf32> to vector<8x32xf32>
    %374 = vector.extract_strided_slice %371 {offsets = [0, 32], sizes = [8, 32], strides = [1, 1]} : vector<8x128xf32> to vector<8x32xf32>
    %375 = vector.extract_strided_slice %372 {offsets = [0, 64], sizes = [8, 32], strides = [1, 1]} : vector<8x128xf32> to vector<8x32xf32>
    %376 = vector.extract_strided_slice %371 {offsets = [0, 96], sizes = [8, 32], strides = [1, 1]} : vector<8x128xf32> to vector<8x32xf32>
    %377 = arith.mulf %374, %361 : vector<8x32xf32>
    %378 = arith.mulf %373, %375 : vector<8x32xf32>
    %379 = arith.addf %377, %378 : vector<8x32xf32>
    %380 = math.tanh %379 : vector<8x32xf32>
    %381 = arith.mulf %376, %380 : vector<8x32xf32>
    %382 = tpu.concatenate %183, %201, %219, %237, %255, %273, %291, %309, %327, %345, %363, %381 in 0 : vector<8x32xf32>, vector<8x32xf32>, vector<8x32xf32>, vector<8x32xf32>, vector<8x32xf32>, vector<8x32xf32>, vector<8x32xf32>, vector<8x32xf32>, vector<8x32xf32>, vector<8x32xf32>, vector<8x32xf32>, vector<8x32xf32> -> vector<96x32xf32>
    %cst_57 = arith.constant dense<0.000000e+00> : vector<96x128xf32>
    %383 = tpu.matmul %382, %5, %cst_57 {dimension_numbers = #tpu.dot_dimension_numbers<[1], [0], [0], [1], [0, 0, 1, 1], [], []>} : vector<96x32xf32>, vector<32x128xf32>, vector<96x128xf32> -> vector<96x128xf32>
    %384 = vector.broadcast %9 : vector<1x128xf32> to vector<96x128xf32>
    %385 = arith.addf %383, %384 : vector<96x128xf32>
    %c0_58 = arith.constant 0 : index
    %c0_59 = arith.constant 0 : index
    %386 = vector.load %arg3[%c0_58, %c0_59] : memref<96x128xf32, #tpu.memory_space<vmem>>, vector<96x128xf32>
    tpu.vector_store %arg3[%c0_58, %c0_59], %385 {strides = array<i32>} : memref<96x128xf32, #tpu.memory_space<vmem>>, vector<96x128xf32>,
    return
  }
}

</mosaic_0001>

<bundles_post_ra>
// kernel: hydro_seq2seq.1
= control target key start
LH: loop header
LB: loop body
LE: loop exit
PB: predicated region body
PF: predicated region fallthrough
CT: control target
= control target key end

     0   :  { %vm45_vm0 = vcmask 64512   ;;  %v1796_v6 = vmov 0.0   ;;  %s1797_s26 = smov 64   ;;  %s1798_s27 = smov 32   ;;  %vm213_vm5 = vcmask 261120   ;;  %s2290_s2 = inlined_call_operand.vmem [shape: f32[152,128], index: 2, kind: input, shape index: {}]   ;;  %s2291_s0 = inlined_call_operand.vmem [shape: f32[64,8], index: 0, kind: input, shape index: {}]   ;;  %s2292_s1 = inlined_call_operand.vmem [shape: f32[96,8], index: 1, kind: input, shape index: {}]   ;;  %s2293_s3 = inlined_call_operand.vmem [shape: f32[96,128], index: 3, kind: output, shape index: {}]  }
   0x1   :  { %v1822_v0 = vld [vmem:[%s2290_s2 + $0x20] sm:$0xff]  ;;  %v1827_v1 = vld [vmem:[%s2290_s2 + $0x18] sm:$0xff]  ;;  %v1840_v4 = vld [vmem:[%s2290_s2 + $0x10] sm:$0xff] }
   0x2   :  { %229 = vmatpush.msra.mxu2 %v1822_v0  ;;  %v14_v2 = vld [vmem:[%s2290_s2] sm:$0xff]  ;;  %292 = vmatpush.msra.mxu3 %v1822_v0  ;;  %v1847_v5 = vld [vmem:[%s2290_s2 + $0x8] sm:$0xff]  ;;  %v1869_v7 = vld [vmem:[%s2290_s2 + $0x90] ss:$0 sm:$0xff] }
   0x3   :  { %v36_v3 = vld [vmem:[%s2291_s0] sm:$0xff]  ;;  %85 = vmatpush.msra.mxu0 %v14_v2  ;;  %v37_v34 = vld [vmem:[%s2291_s0 + $0x8] sm:$0xff]  ;;  %v38_v62 = vld [vmem:[%s2291_s0 + $0x10] sm:$0xff] }
   0x4   :  { %230 = vmatpush.msra.mxu2 %v1827_v1  ;;  %1549 = vmatmul.msk.f32.vlgmr.msra.gmra.mxu0 %vm45_vm0, %v36_v3 }
   0x5   :  { %293 = vmatpush.msra.mxu3 %v1827_v1 }
   0x6   :  { %231 = vmatpush.msra.mxu2 %v1840_v4 }
   0x7   :  { %294 = vmatpush.msra.mxu3 %v1840_v4 }
   0x8   :  { %232 = vmatpush.msra.mxu2 %v1847_v5 }
   0x9   :  { %233 = vmatmul.f32.vlgmr.msra.gmra.mxu2 %v1796_v6  ;;  %295 = vmatpush.msra.mxu3 %v1847_v5 }
   0xa   :  { %355 = vmatpush.msrb.mxu2 %v1822_v0 }
   0xb   :  { %418 = vmatpush.msrb.mxu3 %v1822_v0 }
   0xc   :  { %356 = vmatpush.msrb.mxu2 %v1827_v1  ;;  %1550 = vmatmul.msk.f32.gmra.mxu0 %vm45_vm0, %v37_v34 }
   0xd   :  { %419 = vmatpush.msrb.mxu3 %v1827_v1 }
   0xe   :  { %357 = vmatpush.msrb.mxu2 %v1840_v4 }
   0xf   :  { %420 = vmatpush.msrb.mxu3 %v1840_v4 }
  0x10   :  { %358 = vmatpush.msrb.mxu2 %v1847_v5 }
  0x11   :  { %421 = vmatpush.msrb.mxu3 %v1847_v5 }
  0x12   :  { %481 = vmatpush.msra.mxu2 %v1822_v0 }
  0x14   :  { %482 = vmatpush.msra.mxu2 %v1827_v1  ;;  %1551 = vmatmul.msk.f32.gmra.mxu0 %vm45_vm0, %v38_v62 }
  0x16   :  { %483 = vmatpush.msra.mxu2 %v1840_v4 }
  0x18   :  { %484 = vmatpush.msra.mxu2 %v1847_v5 }
  0x81   :  { %v87_v8 = vpop.f32.mrf.mxu0 }
  0x82   :  { %v88_v9 = vadd.f32 %v1869_v7, %v87_v8 }
  0x89   :  { %v90_v36 = vpop.f32.mrf.mxu0 }
  0x8a   :  { %v91_v37 = vadd.f32 %v1869_v7, %v90_v36 }
  0x8c   :  { %v234_v10 = vpop.f32.mrf.mxu2 }
  0x8d   :  { %v237_v11 = vadd.f32 %v234_v10, %v88_v9 }
  0x8f   :  { %1635 = vtanh.f32 %v237_v11  ;;  %v1569_v13 = vmul.f32 -1.442695, %v237_v11 }
  0x91   :  { %1637 = vpow2.f32 %v1569_v13  ;;  %v93_v2 = vpop.f32.mrf.mxu0 }
  0x92   :  { %v94_v3 = vadd.f32 %v1869_v7, %v93_v2 }
  0x95   :  { %v1636_v12 = vpop.eup %1635 }
  0x96   :  { %260 = vrot.lane.b32.xlu0 %v1636_v12, %s1797_s26 }
  0x97   :  { %v1638_v14 = vpop.eup %1637 }
  0x98   :  { %v241_v15 = vadd.f32 1.0, %v1638_v14 }
  0x9a   :  { %1639 = vrcp.f32 %v241_v15  ;;  %v253_v21 = vand.u32 2147483648, %v241_v15  ;;  %vm247_vm2 = vweird.f32 %v241_v15  ;;  %v251_v22 = vand.u32 2147483647, %v241_v15 }
  0x9c   :  { %v254_v24 = vor.u32 1.1754944e-38, %v253_v21  ;;  %vm252_vm4 = vcmp.eq.f32.partialorder %v251_v22, 8.507059e+37 }
  0xa0   :  { %v1640_v16 = vpop.eup %1639 }
  0xa1   :  { %v243_v17 = vmul.f32 %v1640_v16, %v241_v15  ;;  %vm248_vm1 = vweird.f32 %v1640_v16 }
  0xa2   :  { %vm249_vm3 = vmor %vm247_vm2, %vm248_vm1 }
  0xa3   :  { %v244_v18 = vsub.f32 1.0, %v243_v17 }
  0xa5   :  { %v245_v19 = vmul.f32 %v1640_v16, %v244_v18 }
  0xa7   :  { %v246_v20 = vadd.f32 %v1640_v16, %v245_v19 }
  0xa9   :  { %v250_v23 = vsel %vm249_vm3, %v1640_v16, %v246_v20 }
  0xaa   :  { %v255_v26 = vsel %vm252_vm4, %v254_v24, %v250_v23 }
  0xab   :  { %v258_v28 = vmul.f32 0.0, %v255_v26 }
 0x108   :  { %v261_v25 = vpop.permute.xlu0 %260 }
 0x109   :  { %v263_v27 = vmul.f32 %v261_v25, %v255_v26 }
 0x10b   :  { %265 = vrot.lane.b32.xlu0 %v263_v27, %s1798_s27 }
 0x17d   :  { %v266_v29 = vpop.permute.xlu0 %265 }
 0x17e   :  { %v268_v30 = vadd.f32 %v266_v29, %v258_v28 }
 0x180   :  { %1641 = vtanh.f32 %v268_v30 }
 0x186   :  { %v1642_v31 = vpop.eup %1641 }
 0x187   :  { %271 = vrot.lane.b32.xlu1 %v1642_v31, %s1797_s26  ;;  %v39_v31 = vld [vmem:[%s2291_s0 + $0x18] sm:$0xff] }
 0x188   :  { %1552 = vmatmul.msk.f32.gmra.mxu0 %vm45_vm0, %v39_v31 }
 0x1f9   :  { %v272_v32 = vpop.permute.xlu1 %271 }
 0x1fa   :  { %v274_v33 = vmul.f32 %v272_v32, %v255_v26 }
 0x1fc   :  { %276 = vrot.lane.b32.xlu1 %v274_v33, %s1798_s27 }
 0x205   :  { %v96_v33 = vpop.f32.mrf.mxu0 }
 0x206   :  { %v97_v34 = vadd.f32 %v1869_v7, %v96_v33 }
 0x26e   :  { %v277_v35 = vpop.permute.xlu1 %276 }
 0x26f   :  { %1570 = vmatmul.msk.f32.vlgmr.msra.gmra.mxu3 %vm213_vm5, %v277_v35 }
 0x270   :  { %544 = vmatpush.msra.mxu3 %v1822_v0 }
 0x272   :  { %545 = vmatpush.msra.mxu3 %v1827_v1 }
 0x274   :  { %546 = vmatpush.msra.mxu3 %v1840_v4 }
 0x276   :  { %547 = vmatpush.msra.mxu3 %v1847_v5 }
 0x2f2   :  { %v297_v38 = vpop.f32.mrf.mxu3 }
 0x2f3   :  { %v300_v39 = vadd.f32 %v297_v38, %v91_v37 }
 0x2f5   :  { %1643 = vtanh.f32 %v300_v39  ;;  %v1571_v41 = vmul.f32 -1.442695, %v300_v39 }
 0x2f7   :  { %1645 = vpow2.f32 %v1571_v41 }
 0x2fb   :  { %v1644_v40 = vpop.eup %1643 }
 0x2fc   :  { %323 = vrot.lane.b32.xlu2 %v1644_v40, %s1797_s26 }
 0x2fd   :  { %v1646_v42 = vpop.eup %1645 }
 0x2fe   :  { %v304_v43 = vadd.f32 1.0, %v1646_v42 }
 0x300   :  { %1647 = vrcp.f32 %v304_v43  ;;  %v316_v49 = vand.u32 2147483648, %v304_v43  ;;  %vm310_vm7 = vweird.f32 %v304_v43  ;;  %v314_v50 = vand.u32 2147483647, %v304_v43 }
 0x302   :  { %v317_v52 = vor.u32 1.1754944e-38, %v316_v49  ;;  %vm315_vm9 = vcmp.eq.f32.partialorder %v314_v50, 8.507059e+37 }
 0x306   :  { %v1648_v44 = vpop.eup %1647 }
 0x307   :  { %v306_v45 = vmul.f32 %v1648_v44, %v304_v43  ;;  %vm311_vm6 = vweird.f32 %v1648_v44 }
 0x308   :  { %vm312_vm8 = vmor %vm310_vm7, %vm311_vm6 }
 0x309   :  { %v307_v46 = vsub.f32 1.0, %v306_v45 }
 0x30b   :  { %v308_v47 = vmul.f32 %v1648_v44, %v307_v46 }
 0x30d   :  { %v309_v48 = vadd.f32 %v1648_v44, %v308_v47 }
 0x30f   :  { %v313_v51 = vsel %vm312_vm8, %v1648_v44, %v309_v48 }
 0x310   :  { %v318_v54 = vsel %vm315_vm9, %v317_v52, %v313_v51 }
 0x311   :  { %v321_v56 = vmul.f32 %v318_v54, %v268_v30 }
 0x356   :  { %v324_v53 = vpop.permute.xlu2 %323 }
 0x357   :  { %v326_v55 = vmul.f32 %v324_v53, %v318_v54 }
 0x359   :  { %328 = vrot.lane.b32.xlu2 %v326_v55, %s1798_s27  ;;  %v40_v55 = vld [vmem:[%s2291_s0 + $0x20] sm:$0xff] }
 0x35a   :  { %1553 = vmatmul.msk.f32.gmra.mxu0 %vm45_vm0, %v40_v55 }
 0x3b3   :  { %v329_v57 = vpop.permute.xlu2 %328 }
 0x3b4   :  { %v331_v58 = vadd.f32 %v329_v57, %v321_v56 }
 0x3b6   :  { %1649 = vtanh.f32 %v331_v58 }
 0x3bc   :  { %v1650_v59 = vpop.eup %1649 }
 0x3bd   :  { %334 = vrot.lane.b32.xlu0 %v1650_v59, %s1797_s26 }
 0x3d7   :  { %v99_v57 = vpop.f32.mrf.mxu0 }
 0x42f   :  { %v335_v60 = vpop.permute.xlu0 %334 }
 0x430   :  { %v337_v61 = vmul.f32 %v335_v60, %v318_v54 }
 0x432   :  { %339 = vrot.lane.b32.xlu1 %v337_v61, %s1798_s27 }
 0x4a4   :  { %v340_v63 = vpop.permute.xlu1 %339 }
 0x4a5   :  { %1572 = vmatmul.msk.f32.vlgmr.msrb.gmra.mxu2 %vm213_vm5, %v340_v63 }
 0x4a6   :  { %607 = vmatpush.msrb.mxu2 %v1822_v0 }
 0x4a8   :  { %608 = vmatpush.msrb.mxu2 %v1827_v1 }
 0x4aa   :  { %609 = vmatpush.msrb.mxu2 %v1840_v4 }
 0x4ac   :  { %610 = vmatpush.msrb.mxu2 %v1847_v5 }
 0x528   :  { %v360_v6 = vpop.f32.mrf.mxu2 }
 0x529   :  { %v363_v8 = vadd.f32 %v360_v6, %v94_v3 }
 0x52b   :  { %1651 = vtanh.f32 %v363_v8  ;;  %v1573_v10 = vmul.f32 -1.442695, %v363_v8 }
 0x52d   :  { %1653 = vpow2.f32 %v1573_v10 }
 0x531   :  { %v1652_v9 = vpop.eup %1651 }
 0x532   :  { %386 = vrot.lane.b32.xlu2 %v1652_v9, %s1797_s26 }
 0x533   :  { %v1654_v11 = vpop.eup %1653 }
 0x534   :  { %v367_v12 = vadd.f32 1.0, %v1654_v11 }
 0x536   :  { %1655 = vrcp.f32 %v367_v12  ;;  %v379_v18 = vand.u32 2147483648, %v367_v12  ;;  %vm373_vm11 = vweird.f32 %v367_v12  ;;  %v377_v19 = vand.u32 2147483647, %v367_v12 }
 0x538   :  { %v380_v21 = vor.u32 1.1754944e-38, %v379_v18  ;;  %vm378_vm13 = vcmp.eq.f32.partialorder %v377_v19, 8.507059e+37 }
 0x53c   :  { %v1656_v13 = vpop.eup %1655 }
 0x53d   :  { %v369_v14 = vmul.f32 %v1656_v13, %v367_v12  ;;  %vm374_vm10 = vweird.f32 %v1656_v13 }
 0x53e   :  { %vm375_vm12 = vmor %vm373_vm11, %vm374_vm10 }
 0x53f   :  { %v370_v15 = vsub.f32 1.0, %v369_v14 }
 0x541   :  { %v371_v16 = vmul.f32 %v1656_v13, %v370_v15 }
 0x543   :  { %v372_v17 = vadd.f32 %v1656_v13, %v371_v16 }
 0x545   :  { %v376_v20 = vsel %vm375_vm12, %v1656_v13, %v372_v17 }
 0x546   :  { %v381_v23 = vsel %vm378_vm13, %v380_v21, %v376_v20 }
 0x547   :  { %v384_v25 = vmul.f32 %v381_v23, %v331_v58  ;;  %v100_v58 = vadd.f32 %v1869_v7, %v99_v57 }
 0x58c   :  { %v387_v22 = vpop.permute.xlu2 %386 }
 0x58d   :  { %v389_v24 = vmul.f32 %v387_v22, %v381_v23 }
 0x58f   :  { %391 = vrot.lane.b32.xlu0 %v389_v24, %s1798_s27  ;;  %v41_v24 = vld [vmem:[%s2291_s0 + $0x28] sm:$0xff] }
 0x590   :  { %1554 = vmatmul.msk.f32.gmra.mxu0 %vm45_vm0, %v41_v24 }
 0x601   :  { %v392_v26 = vpop.permute.xlu0 %391 }
 0x602   :  { %v394_v27 = vadd.f32 %v392_v26, %v384_v25 }
 0x604   :  { %1657 = vtanh.f32 %v394_v27 }
 0x60a   :  { %v1658_v28 = vpop.eup %1657 }
 0x60b   :  { %397 = vrot.lane.b32.xlu1 %v1658_v28, %s1797_s26 }
 0x60d   :  { %v102_v26 = vpop.f32.mrf.mxu0 }
 0x67d   :  { %v398_v29 = vpop.permute.xlu1 %397 }
 0x67e   :  { %v400_v30 = vmul.f32 %v398_v29, %v381_v23 }
 0x680   :  { %402 = vrot.lane.b32.xlu2 %v400_v30, %s1798_s27 }
 0x6da   :  { %v403_v32 = vpop.permute.xlu2 %402 }
 0x6db   :  { %1574 = vmatmul.msk.f32.vlgmr.msrb.gmra.mxu3 %vm213_vm5, %v403_v32 }
 0x6dc   :  { %670 = vmatpush.msrb.mxu3 %v1822_v0 }
 0x6de   :  { %671 = vmatpush.msrb.mxu3 %v1827_v1 }
 0x6e0   :  { %672 = vmatpush.msrb.mxu3 %v1840_v4 }
 0x6e2   :  { %673 = vmatpush.msrb.mxu3 %v1847_v5 }
 0x75e   :  { %v423_v35 = vpop.f32.mrf.mxu3 }
 0x75f   :  { %v426_v36 = vadd.f32 %v423_v35, %v97_v34 }
 0x761   :  { %1659 = vtanh.f32 %v426_v36  ;;  %v1575_v38 = vmul.f32 -1.442695, %v426_v36 }
 0x763   :  { %1661 = vpow2.f32 %v1575_v38 }
 0x767   :  { %v1660_v37 = vpop.eup %1659 }
 0x768   :  { %449 = vrot.lane.b32.xlu0 %v1660_v37, %s1797_s26 }
 0x769   :  { %v1662_v39 = vpop.eup %1661 }
 0x76a   :  { %v430_v40 = vadd.f32 1.0, %v1662_v39 }
 0x76c   :  { %1663 = vrcp.f32 %v430_v40  ;;  %v442_v5 = vand.u32 2147483648, %v430_v40  ;;  %vm436_vm15 = vweird.f32 %v430_v40  ;;  %v440_v43 = vand.u32 2147483647, %v430_v40 }
 0x76e   :  { %v443_v45 = vor.u32 1.1754944e-38, %v442_v5  ;;  %vm441_vm2 = vcmp.eq.f32.partialorder %v440_v43, 8.507059e+37 }
 0x772   :  { %v1664_v0 = vpop.eup %1663 }
 0x773   :  { %v432_v1 = vmul.f32 %v1664_v0, %v430_v40  ;;  %vm437_vm14 = vweird.f32 %v1664_v0 }
 0x774   :  { %vm438_vm1 = vmor %vm436_vm15, %vm437_vm14 }
 0x775   :  { %v433_v41 = vsub.f32 1.0, %v432_v1 }
 0x777   :  { %v434_v4 = vmul.f32 %v1664_v0, %v433_v41 }
 0x779   :  { %v435_v42 = vadd.f32 %v1664_v0, %v434_v4 }
 0x77b   :  { %v439_v44 = vsel %vm438_vm1, %v1664_v0, %v435_v42 }
 0x77c   :  { %v444_v47 = vsel %vm441_vm2, %v443_v45, %v439_v44 }
 0x77d   :  { %v447_v49 = vmul.f32 %v444_v47, %v394_v27  ;;  %v103_v27 = vadd.f32 %v1869_v7, %v102_v26 }
 0x7da   :  { %v450_v46 = vpop.permute.xlu0 %449 }
 0x7db   :  { %v452_v48 = vmul.f32 %v450_v46, %v444_v47 }
 0x7dd   :  { %454 = vrot.lane.b32.xlu1 %v452_v48, %s1798_s27  ;;  %v42_v48 = vld [vmem:[%s2291_s0 + $0x30] sm:$0xff] }
 0x7de   :  { %1555 = vmatmul.msk.f32.gmra.mxu0 %vm45_vm0, %v42_v48 }
 0x84f   :  { %v455_v50 = vpop.permute.xlu1 %454 }
 0x850   :  { %v457_v51 = vadd.f32 %v455_v50, %v447_v49 }
 0x852   :  { %1665 = vtanh.f32 %v457_v51 }
 0x858   :  { %v1666_v52 = vpop.eup %1665 }
 0x859   :  { %460 = vrot.lane.b32.xlu2 %v1666_v52, %s1797_s26 }
 0x85b   :  { %v105_v50 = vpop.f32.mrf.mxu0 }
 0x8b3   :  { %v461_v53 = vpop.permute.xlu2 %460 }
 0x8b4   :  { %v463_v54 = vmul.f32 %v461_v53, %v444_v47 }
 0x8b6   :  { %465 = vrot.lane.b32.xlu0 %v463_v54, %s1798_s27 }
 0x928   :  { %v466_v56 = vpop.permute.xlu0 %465 }
 0x929   :  { %1576 = vmatmul.msk.f32.vlgmr.msra.gmra.mxu2 %vm213_vm5, %v466_v56 }
 0x9ac   :  { %v486_v59 = vpop.f32.mrf.mxu2 }
 0x9ad   :  { %v489_v60 = vadd.f32 %v486_v59, %v100_v58 }
 0x9af   :  { %1667 = vtanh.f32 %v489_v60  ;;  %v1577_v62 = vmul.f32 -1.442695, %v489_v60 }
 0x9b1   :  { %1669 = vpow2.f32 %v1577_v62 }
 0x9b5   :  { %v1668_v61 = vpop.eup %1667 }
 0x9b6   :  { %512 = vrot.lane.b32.xlu1 %v1668_v61, %s1797_s26 }
 0x9b7   :  { %v1670_v63 = vpop.eup %1669 }
 0x9b8   :  { %v493_v2 = vadd.f32 1.0, %v1670_v63 }
 0x9ba   :  { %1671 = vrcp.f32 %v493_v2  ;;  %v505_v11 = vand.u32 2147483648, %v493_v2  ;;  %vm499_vm4 = vweird.f32 %v493_v2  ;;  %v503_v12 = vand.u32 2147483647, %v493_v2 }
 0x9bc   :  { %v506_v14 = vor.u32 1.1754944e-38, %v505_v11  ;;  %vm504_vm7 = vcmp.eq.f32.partialorder %v503_v12, 8.507059e+37 }
 0x9c0   :  { %v1672_v3 = vpop.eup %1671 }
 0x9c1   :  { %v495_v6 = vmul.f32 %v1672_v3, %v493_v2  ;;  %vm500_vm3 = vweird.f32 %v1672_v3 }
 0x9c2   :  { %vm501_vm6 = vmor %vm499_vm4, %vm500_vm3 }
 0x9c3   :  { %v496_v8 = vsub.f32 1.0, %v495_v6 }
 0x9c5   :  { %v497_v9 = vmul.f32 %v1672_v3, %v496_v8 }
 0x9c7   :  { %v498_v10 = vadd.f32 %v1672_v3, %v497_v9 }
 0x9c9   :  { %v502_v13 = vsel %vm501_vm6, %v1672_v3, %v498_v10 }
 0x9ca   :  { %v507_v16 = vsel %vm504_vm7, %v506_v14, %v502_v13 }
 0x9cb   :  { %v510_v18 = vmul.f32 %v507_v16, %v457_v51  ;;  %v106_v51 = vadd.f32 %v1869_v7, %v105_v50  ;;  %v1633_v50 = vld [vmem:[%s2290_s2 + $0x92] ss:$0 sm:$0xff] }
 0xa28   :  { %v513_v15 = vpop.permute.xlu1 %512 }
 0xa29   :  { %v515_v17 = vmul.f32 %v513_v15, %v507_v16 }
 0xa2b   :  { %517 = vrot.lane.b32.xlu2 %v515_v17, %s1798_s27  ;;  %v43_v17 = vld [vmem:[%s2291_s0 + $0x38] sm:$0xff] }
 0xa2c   :  { %1556 = vmatmul.msk.f32.gmra.mxu0 %vm45_vm0, %v43_v17  ;;  %v2008_v17 = vld [vmem:[%s2290_s2 + $0x58] sm:$0xff] }
 0xa85   :  { %v518_v19 = vpop.permute.xlu2 %517 }
 0xa86   :  { %v520_v20 = vadd.f32 %v518_v19, %v510_v18 }
 0xa88   :  { %1673 = vtanh.f32 %v520_v20 }
 0xa8e   :  { %v1674_v21 = vpop.eup %1673 }
 0xa8f   :  { %523 = vrot.lane.b32.xlu0 %v1674_v21, %s1797_s26 }
 0xaa9   :  { %v108_v19 = vpop.f32.mrf.mxu0 }
 0xb01   :  { %v524_v22 = vpop.permute.xlu0 %523 }
 0xb02   :  { %v526_v23 = vmul.f32 %v524_v22, %v507_v16 }
 0xb04   :  { %528 = vrot.lane.b32.xlu1 %v526_v23, %s1798_s27 }
 0xb76   :  { %v529_v25 = vpop.permute.xlu1 %528 }
 0xb77   :  { %1578 = vmatmul.msk.f32.vlgmr.msra.gmra.mxu3 %vm213_vm5, %v529_v25 }
 0xbfa   :  { %v549_v28 = vpop.f32.mrf.mxu3 }
 0xbfb   :  { %v552_v29 = vadd.f32 %v549_v28, %v103_v27 }
 0xbfd   :  { %1675 = vtanh.f32 %v552_v29  ;;  %v1579_v31 = vmul.f32 -1.442695, %v552_v29 }
 0xbff   :  { %1677 = vpow2.f32 %v1579_v31 }
 0xc03   :  { %v1676_v30 = vpop.eup %1675 }
 0xc04   :  { %575 = vrot.lane.b32.xlu2 %v1676_v30, %s1797_s26 }
 0xc05   :  { %v1678_v32 = vpop.eup %1677 }
 0xc06   :  { %v556_v33 = vadd.f32 1.0, %v1678_v32 }
 0xc08   :  { %1679 = vrcp.f32 %v556_v33  ;;  %v568_v39 = vand.u32 2147483648, %v556_v33  ;;  %vm562_vm9 = vweird.f32 %v556_v33  ;;  %v566_v40 = vand.u32 2147483647, %v556_v33 }
 0xc0a   :  { %v569_v1 = vor.u32 1.1754944e-38, %v568_v39  ;;  %vm567_vm11 = vcmp.eq.f32.partialorder %v566_v40, 8.507059e+37 }
 0xc0e   :  { %v1680_v34 = vpop.eup %1679 }
 0xc0f   :  { %v558_v35 = vmul.f32 %v1680_v34, %v556_v33  ;;  %vm563_vm8 = vweird.f32 %v1680_v34 }
 0xc10   :  { %vm564_vm10 = vmor %vm562_vm9, %vm563_vm8 }
 0xc11   :  { %v559_v36 = vsub.f32 1.0, %v558_v35 }
 0xc13   :  { %v560_v37 = vmul.f32 %v1680_v34, %v559_v36 }
 0xc15   :  { %v561_v38 = vadd.f32 %v1680_v34, %v560_v37 }
 0xc17   :  { %v565_v0 = vsel %vm564_vm10, %v1680_v34, %v561_v38 }
 0xc18   :  { %v570_v4 = vsel %vm567_vm11, %v569_v1, %v565_v0  ;;  %v23_v1 = vld [vmem:[%s2290_s2 + $0x48] sm:$0xff] }
 0xc19   :  { %v573_v5 = vmul.f32 %v570_v4, %v520_v20  ;;  %v109_v20 = vadd.f32 %v1869_v7, %v108_v19  ;;  %735 = vmatpush.msra.mxu2 %v23_v1 }
 0xc5e   :  { %v576_v41 = vpop.permute.xlu2 %575 }
 0xc5f   :  { %v578_v42 = vmul.f32 %v576_v41, %v570_v4  ;;  %v22_v41 = vld [vmem:[%s2290_s2 + $0x40] sm:$0xff] }
 0xc60   :  { %736 = vmatpush.msra.mxu2 %v22_v41 }
 0xc61   :  { %580 = vrot.lane.b32.xlu0 %v578_v42, %s1798_s27  ;;  %v20_v42 = vld [vmem:[%s2290_s2 + $0x30] sm:$0xff] }
 0xcd3   :  { %v581_v43 = vpop.permute.xlu0 %580 }
 0xcd4   :  { %v583_v44 = vadd.f32 %v581_v43, %v573_v5 }
 0xcd6   :  { %1681 = vtanh.f32 %v583_v44 }
 0xcdc   :  { %v1682_v45 = vpop.eup %1681 }
 0xcdd   :  { %586 = vrot.lane.b32.xlu1 %v1682_v45, %s1797_s26  ;;  %v111_v45 = vld [vmem:[%s2292_s1] sm:$0xff] }
 0xd4f   :  { %v587_v46 = vpop.permute.xlu1 %586 }
 0xd50   :  { %v589_v47 = vmul.f32 %v587_v46, %v570_v4  ;;  %v21_v4 = vld [vmem:[%s2290_s2 + $0x38] sm:$0xff] }
 0xd51   :  { %737 = vmatpush.msra.mxu2 %v21_v4 }
 0xd52   :  { %591 = vrot.lane.b32.xlu2 %v589_v47, %s1798_s27  ;;  %v1981_v47 = vld [vmem:[%s2290_s2 + $0x91] ss:$0 sm:$0xff] }
 0xd53   :  { %738 = vmatpush.msra.mxu2 %v20_v42 }
 0xdac   :  { %v592_v49 = vpop.permute.xlu2 %591 }
 0xdad   :  { %1580 = vmatmul.msk.f32.vlgmr.msrb.gmra.mxu2 %vm213_vm5, %v592_v49 }
 0xe30   :  { %v612_v52 = vpop.f32.mrf.mxu2 }
 0xe31   :  { %v615_v53 = vadd.f32 %v612_v52, %v106_v51 }
 0xe33   :  { %1683 = vtanh.f32 %v615_v53  ;;  %v1581_v55 = vmul.f32 -1.442695, %v615_v53 }
 0xe35   :  { %1685 = vpow2.f32 %v1581_v55 }
 0xe39   :  { %v1684_v54 = vpop.eup %1683 }
 0xe3a   :  { %638 = vrot.lane.b32.xlu0 %v1684_v54, %s1797_s26 }
 0xe3b   :  { %v1686_v56 = vpop.eup %1685 }
 0xe3c   :  { %v619_v57 = vadd.f32 1.0, %v1686_v56 }
 0xe3e   :  { %1687 = vrcp.f32 %v619_v57  ;;  %v631_v63 = vand.u32 2147483648, %v619_v57  ;;  %vm625_vm13 = vweird.f32 %v619_v57  ;;  %v629_v2 = vand.u32 2147483647, %v619_v57 }
 0xe40   :  { %v632_v6 = vor.u32 1.1754944e-38, %v631_v63  ;;  %vm630_vm15 = vcmp.eq.f32.partialorder %v629_v2, 8.507059e+37 }
 0xe44   :  { %v1688_v58 = vpop.eup %1687 }
 0xe45   :  { %v621_v59 = vmul.f32 %v1688_v58, %v619_v57  ;;  %vm626_vm12 = vweird.f32 %v1688_v58 }
 0xe46   :  { %vm627_vm14 = vmor %vm625_vm13, %vm626_vm12 }
 0xe47   :  { %v622_v60 = vsub.f32 1.0, %v621_v59 }
 0xe49   :  { %v623_v61 = vmul.f32 %v1688_v58, %v622_v60 }
 0xe4b   :  { %v624_v62 = vadd.f32 %v1688_v58, %v623_v61 }
 0xe4d   :  { %v628_v3 = vsel %vm627_vm14, %v1688_v58, %v624_v62 }
 0xe4e   :  { %v633_v9 = vsel %vm630_vm15, %v632_v6, %v628_v3 }
 0xe4f   :  { %v636_v11 = vmul.f32 %v633_v9, %v583_v44  ;;  %v19_v44 = vld [vmem:[%s2290_s2 + $0x28] sm:$0xff] }
 0xe50   :  { %175 = vmatpush.msra.mxu1 %v19_v44  ;;  %v113_v44 = vld [vmem:[%s2292_s1 + $0x10] sm:$0xff] }
 0xe51   :  { %1557 = vmatmul.msk.f32.vlgmr.msra.gmra.mxu1 %vm45_vm0, %v111_v45 }
 0xeac   :  { %v639_v8 = vpop.permute.xlu0 %638 }
 0xead   :  { %v641_v10 = vmul.f32 %v639_v8, %v633_v9 }
 0xeaf   :  { %643 = vrot.lane.b32.xlu1 %v641_v10, %s1798_s27 }
 0xece   :  { %v177_v48 = vpop.f32.mrf.mxu1 }
 0xecf   :  { %v178_v49 = vadd.f32 %v1981_v47, %v177_v48 }
 0xed1   :  { %v717_v51 = vadd.f32 %v1633_v50, %v178_v49 }
 0xf21   :  { %v644_v12 = vpop.permute.xlu1 %643 }
 0xf22   :  { %v646_v13 = vadd.f32 %v644_v12, %v636_v11 }
 0xf24   :  { %1689 = vtanh.f32 %v646_v13 }
 0xf2a   :  { %v1690_v14 = vpop.eup %1689 }
 0xf2b   :  { %649 = vrot.lane.b32.xlu2 %v1690_v14, %s1797_s26 }
 0xf85   :  { %v650_v15 = vpop.permute.xlu2 %649 }
 0xf86   :  { %v652_v16 = vmul.f32 %v650_v15, %v633_v9  ;;  %v1996_v15 = vld [vmem:[%s2290_s2 + $0x68] sm:$0xff] }
 0xf87   :  { %798 = vmatpush.msra.mxu3 %v1996_v15  ;;  %861 = vmatpush.msrb.mxu2 %v1996_v15 }
 0xf88   :  { %654 = vrot.lane.b32.xlu0 %v652_v16, %s1798_s27  ;;  %v2001_v16 = vld [vmem:[%s2290_s2 + $0x60] sm:$0xff]  ;;  %1239 = vmatpush.msrb.mxu1 %v1996_v15 }
 0xf89   :  { %1428 = vmatpush.msrb.mxu0 %v1996_v15  ;;  %799 = vmatpush.msra.mxu3 %v2001_v16 }
 0xf8a   :  { %862 = vmatpush.msrb.mxu2 %v2001_v16  ;;  %1240 = vmatpush.msrb.mxu1 %v2001_v16 }
 0xf8b   :  { %1429 = vmatpush.msrb.mxu0 %v2001_v16  ;;  %800 = vmatpush.msra.mxu3 %v2008_v17 }
 0xf8c   :  { %863 = vmatpush.msrb.mxu2 %v2008_v17  ;;  %1241 = vmatpush.msrb.mxu1 %v2008_v17 }
 0xf8d   :  { %1430 = vmatpush.msrb.mxu0 %v2008_v17 }
 0xffa   :  { %v655_v18 = vpop.permute.xlu0 %654 }
 0xffb   :  { %1582 = vmatmul.msk.f32.vlgmr.msrb.gmra.mxu3 %vm213_vm5, %v655_v18  ;;  %v2017_v18 = vld [vmem:[%s2290_s2 + $0x50] sm:$0xff] }
 0xffc   :  { %801 = vmatpush.msra.mxu3 %v2017_v18  ;;  %864 = vmatpush.msrb.mxu2 %v2017_v18 }
 0xffd   :  { %1242 = vmatpush.msrb.mxu1 %v2017_v18  ;;  %1431 = vmatpush.msrb.mxu0 %v2017_v18 }
 0xffe   :  { %924 = vmatpush.msrb.mxu3 %v1996_v15 }
0x1000   :  { %925 = vmatpush.msrb.mxu3 %v2001_v16 }
0x1002   :  { %926 = vmatpush.msrb.mxu3 %v2008_v17 }
0x1004   :  { %927 = vmatpush.msrb.mxu3 %v2017_v18 }
0x107e   :  { %v675_v21 = vpop.f32.mrf.mxu3 }
0x107f   :  { %v678_v22 = vadd.f32 %v675_v21, %v109_v20  ;;  %v112_v21 = vld [vmem:[%s2292_s1 + $0x8] sm:$0xff] }
0x1080   :  { %1558 = vmatmul.msk.f32.gmra.mxu1 %vm45_vm0, %v112_v21 }
0x1081   :  { %1691 = vtanh.f32 %v678_v22  ;;  %v1583_v24 = vmul.f32 -1.442695, %v678_v22 }
0x1083   :  { %1693 = vpow2.f32 %v1583_v24 }
0x1087   :  { %v1692_v23 = vpop.eup %1691 }
0x1088   :  { %701 = vrot.lane.b32.xlu1 %v1692_v23, %s1797_s26  ;;  %1559 = vmatmul.msk.f32.gmra.mxu1 %vm45_vm0, %v113_v44 }
0x1089   :  { %v1694_v25 = vpop.eup %1693 }
0x108a   :  { %v682_v26 = vadd.f32 1.0, %v1694_v25 }
0x108c   :  { %1695 = vrcp.f32 %v682_v26  ;;  %v694_v32 = vand.u32 2147483648, %v682_v26  ;;  %vm688_vm2 = vweird.f32 %v682_v26  ;;  %v692_v7 = vand.u32 2147483647, %v682_v26 }
0x108e   :  { %v695_v34 = vor.u32 1.1754944e-38, %v694_v32  ;;  %vm693_vm4 = vcmp.eq.f32.partialorder %v692_v7, 8.507059e+37 }
0x1092   :  { %v1696_v27 = vpop.eup %1695 }
0x1093   :  { %v684_v28 = vmul.f32 %v1696_v27, %v682_v26  ;;  %vm689_vm1 = vweird.f32 %v1696_v27 }
0x1094   :  { %vm690_vm3 = vmor %vm688_vm2, %vm689_vm1 }
0x1095   :  { %v685_v29 = vsub.f32 1.0, %v684_v28 }
0x1097   :  { %v686_v30 = vmul.f32 %v1696_v27, %v685_v29 }
0x1099   :  { %v687_v31 = vadd.f32 %v1696_v27, %v686_v30 }
0x109b   :  { %v691_v33 = vsel %vm690_vm3, %v1696_v27, %v687_v31 }
0x109c   :  { %v696_v36 = vsel %vm693_vm4, %v695_v34, %v691_v33 }
0x109d   :  { %v699_v38 = vmul.f32 %v696_v36, %v646_v13 }
0x10fa   :  { %v702_v35 = vpop.permute.xlu1 %701 }
0x10fb   :  { %v704_v37 = vmul.f32 %v702_v35, %v696_v36 }
0x10fd   :  { %706 = vrot.lane.b32.xlu2 %v704_v37, %s1798_s27  ;;  %v180_v23 = vpop.f32.mrf.mxu1 }
0x10fe   :  { %v181_v24 = vadd.f32 %v1981_v47, %v180_v23 }
0x1157   :  { %v707_v39 = vpop.permute.xlu2 %706 }
0x1158   :  { %v709_v40 = vadd.f32 %v707_v39, %v699_v38 }
0x115a   :  { %1697 = vtanh.f32 %v709_v40 }
0x1160   :  { %v1698_v0 = vpop.eup %1697 }
0x1161   :  { %712 = vrot.lane.b32.xlu0 %v1698_v0, %s1797_s26 }
0x11d3   :  { %v713_v5 = vpop.permute.xlu0 %712 }
0x11d4   :  { %v715_v43 = vmul.f32 %v713_v5, %v696_v36 }
0x11d6   :  { %719 = vrot.lane.b32.xlu1 %v715_v43, %s1798_s27 }
0x1248   :  { %v720_v46 = vpop.permute.xlu1 %719 }
0x1249   :  { %1584 = vmatmul.msk.f32.vlgmr.msra.gmra.mxu2 %vm213_vm5, %v720_v46  ;;  %v183_v46 = vpop.f32.mrf.mxu1 }
0x124a   :  { %987 = vmatpush.msra.mxu2 %v1996_v15  ;;  %v184_v48 = vadd.f32 %v1981_v47, %v183_v46 }
0x124c   :  { %988 = vmatpush.msra.mxu2 %v2001_v16 }
0x124e   :  { %989 = vmatpush.msra.mxu2 %v2008_v17 }
0x1250   :  { %990 = vmatpush.msra.mxu2 %v2017_v18 }
0x12cc   :  { %v740_v52 = vpop.f32.mrf.mxu2 }
0x12cd   :  { %v743_v53 = vadd.f32 %v740_v52, %v717_v51 }
0x12cf   :  { %1699 = vtanh.f32 %v743_v53  ;;  %v1585_v55 = vmul.f32 -1.442695, %v743_v53 }
0x12d1   :  { %1701 = vpow2.f32 %v1585_v55 }
0x12d5   :  { %v1700_v54 = vpop.eup %1699 }
0x12d6   :  { %766 = vrot.lane.b32.xlu2 %v1700_v54, %s1797_s26 }
0x12d7   :  { %v1702_v56 = vpop.eup %1701 }
0x12d8   :  { %v747_v57 = vadd.f32 1.0, %v1702_v56 }
0x12da   :  { %1703 = vrcp.f32 %v747_v57  ;;  %v759_v63 = vand.u32 2147483648, %v747_v57  ;;  %vm753_vm7 = vweird.f32 %v747_v57  ;;  %v757_v2 = vand.u32 2147483647, %v747_v57 }
0x12dc   :  { %v760_v6 = vor.u32 1.1754944e-38, %v759_v63  ;;  %vm758_vm9 = vcmp.eq.f32.partialorder %v757_v2, 8.507059e+37 }
0x12e0   :  { %v1704_v58 = vpop.eup %1703 }
0x12e1   :  { %v749_v59 = vmul.f32 %v1704_v58, %v747_v57  ;;  %vm754_vm6 = vweird.f32 %v1704_v58 }
0x12e2   :  { %vm755_vm8 = vmor %vm753_vm7, %vm754_vm6 }
0x12e3   :  { %v750_v60 = vsub.f32 1.0, %v749_v59 }
0x12e5   :  { %v751_v61 = vmul.f32 %v1704_v58, %v750_v60 }
0x12e7   :  { %v752_v62 = vadd.f32 %v1704_v58, %v751_v61 }
0x12e9   :  { %v756_v3 = vsel %vm755_vm8, %v1704_v58, %v752_v62 }
0x12ea   :  { %v761_v9 = vsel %vm758_vm9, %v760_v6, %v756_v3 }
0x12eb   :  { %v764_v11 = vmul.f32 %v761_v9, %v709_v40 }
0x1330   :  { %v767_v8 = vpop.permute.xlu2 %766 }
0x1331   :  { %v769_v10 = vmul.f32 %v767_v8, %v761_v9 }
0x1333   :  { %771 = vrot.lane.b32.xlu0 %v769_v10, %s1798_s27 }
0x13a5   :  { %v772_v12 = vpop.permute.xlu0 %771 }
0x13a6   :  { %v1989_v13 = vadd.f32 %v772_v12, %v764_v11 }
0x13a8   :  { %1705 = vtanh.f32 %v1989_v13 }
0x13ae   :  { %v1706_v14 = vpop.eup %1705 }
0x13af   :  { %777 = vrot.lane.b32.xlu1 %v1706_v14, %s1797_s26  ;;  %v114_v14 = vld [vmem:[%s2292_s1 + $0x18] sm:$0xff] }
0x13b0   :  { %1560 = vmatmul.msk.f32.gmra.mxu1 %vm45_vm0, %v114_v14 }
0x1421   :  { %v778_v19 = vpop.permute.xlu1 %777 }
0x1422   :  { %v780_v20 = vmul.f32 %v778_v19, %v761_v9 }
0x1424   :  { %782 = vrot.lane.b32.xlu2 %v780_v20, %s1798_s27 }
0x142d   :  { %v186_v20 = vpop.f32.mrf.mxu1 }
0x142e   :  { %v187_v21 = vadd.f32 %v1981_v47, %v186_v20 }
0x147e   :  { %v2042_v22 = vpop.permute.xlu2 %782 }
0x147f   :  { %1586 = vmatmul.msk.f32.vlgmr.msra.gmra.mxu3 %vm213_vm5, %v2042_v22 }
0x1480   :  { %1050 = vmatpush.msra.mxu3 %v1996_v15 }
0x1482   :  { %1051 = vmatpush.msra.mxu3 %v2001_v16 }
0x1484   :  { %1052 = vmatpush.msra.mxu3 %v2008_v17 }
0x1486   :  { %1053 = vmatpush.msra.mxu3 %v2017_v18 }
0x1502   :  { %v803_v25 = vpop.f32.mrf.mxu3 }
0x1503   :  { %v806_v26 = vadd.f32 %v803_v25, %v181_v24 }
0x1505   :  { %1707 = vtanh.f32 %v806_v26  ;;  %v1587_v28 = vmul.f32 -1.442695, %v806_v26 }
0x1507   :  { %1709 = vpow2.f32 %v1587_v28 }
0x150b   :  { %v1708_v27 = vpop.eup %1707 }
0x150c   :  { %829 = vrot.lane.b32.xlu0 %v1708_v27, %s1797_s26 }
0x150d   :  { %v1710_v29 = vpop.eup %1709 }
0x150e   :  { %v810_v30 = vadd.f32 1.0, %v1710_v29 }
0x1510   :  { %1711 = vrcp.f32 %v810_v30  ;;  %v822_v35 = vand.u32 2147483648, %v810_v30  ;;  %vm816_vm11 = vweird.f32 %v810_v30  ;;  %v820_v36 = vand.u32 2147483647, %v810_v30 }
0x1512   :  { %v823_v38 = vor.u32 1.1754944e-38, %v822_v35  ;;  %vm821_vm13 = vcmp.eq.f32.partialorder %v820_v36, 8.507059e+37 }
0x1516   :  { %v1712_v31 = vpop.eup %1711 }
0x1517   :  { %v812_v32 = vmul.f32 %v1712_v31, %v810_v30  ;;  %vm817_vm10 = vweird.f32 %v1712_v31 }
0x1518   :  { %vm818_vm12 = vmor %vm816_vm11, %vm817_vm10 }
0x1519   :  { %v813_v7 = vsub.f32 1.0, %v812_v32 }
0x151b   :  { %v814_v33 = vmul.f32 %v1712_v31, %v813_v7 }
0x151d   :  { %v815_v34 = vadd.f32 %v1712_v31, %v814_v33 }
0x151f   :  { %v819_v37 = vsel %vm818_vm12, %v1712_v31, %v815_v34 }
0x1520   :  { %v824_v40 = vsel %vm821_vm13, %v823_v38, %v819_v37 }
0x1521   :  { %v827_v1 = vmul.f32 %v824_v40, %v1989_v13 }
0x157e   :  { %v830_v39 = vpop.permute.xlu0 %829 }
0x157f   :  { %v832_v0 = vmul.f32 %v830_v39, %v824_v40 }
0x1581   :  { %834 = vrot.lane.b32.xlu1 %v832_v0, %s1798_s27 }
0x15f3   :  { %v835_v41 = vpop.permute.xlu1 %834 }
0x15f4   :  { %v837_v4 = vadd.f32 %v835_v41, %v827_v1 }
0x15f6   :  { %1713 = vtanh.f32 %v837_v4 }
0x15fc   :  { %v1714_v42 = vpop.eup %1713 }
0x15fd   :  { %840 = vrot.lane.b32.xlu2 %v1714_v42, %s1797_s26 }
0x1657   :  { %v841_v5 = vpop.permute.xlu2 %840 }
0x1658   :  { %v843_v43 = vmul.f32 %v841_v5, %v824_v40  ;;  %v115_v5 = vld [vmem:[%s2292_s1 + $0x20] sm:$0xff] }
0x1659   :  { %1561 = vmatmul.msk.f32.gmra.mxu1 %vm45_vm0, %v115_v5 }
0x165a   :  { %845 = vrot.lane.b32.xlu0 %v843_v43, %s1798_s27 }
0x16cc   :  { %v2060_v45 = vpop.permute.xlu0 %845 }
0x16cd   :  { %1588 = vmatmul.msk.f32.vlgmr.msrb.gmra.mxu2 %vm213_vm5, %v2060_v45 }
0x16ce   :  { %1113 = vmatpush.msrb.mxu2 %v1996_v15 }
0x16d0   :  { %1114 = vmatpush.msrb.mxu2 %v2001_v16 }
0x16d2   :  { %1115 = vmatpush.msrb.mxu2 %v2008_v17 }
0x16d4   :  { %1116 = vmatpush.msrb.mxu2 %v2017_v18 }
0x16d6   :  { %v189_v44 = vpop.f32.mrf.mxu1 }
0x16d7   :  { %v190_v46 = vadd.f32 %v1981_v47, %v189_v44 }
0x1750   :  { %v866_v49 = vpop.f32.mrf.mxu2 }
0x1751   :  { %v869_v50 = vadd.f32 %v866_v49, %v184_v48 }
0x1753   :  { %1715 = vtanh.f32 %v869_v50  ;;  %v1589_v52 = vmul.f32 -1.442695, %v869_v50 }
0x1755   :  { %1717 = vpow2.f32 %v1589_v52 }
0x1759   :  { %v1716_v51 = vpop.eup %1715 }
0x175a   :  { %892 = vrot.lane.b32.xlu1 %v1716_v51, %s1797_s26 }
0x175b   :  { %v1718_v53 = vpop.eup %1717 }
0x175c   :  { %v873_v54 = vadd.f32 1.0, %v1718_v53 }
0x175e   :  { %1719 = vrcp.f32 %v873_v54  ;;  %v885_v60 = vand.u32 2147483648, %v873_v54  ;;  %vm879_vm15 = vweird.f32 %v873_v54  ;;  %v883_v61 = vand.u32 2147483647, %v873_v54 }
0x1760   :  { %v886_v63 = vor.u32 1.1754944e-38, %v885_v60  ;;  %vm884_vm2 = vcmp.eq.f32.partialorder %v883_v61, 8.507059e+37 }
0x1764   :  { %v1720_v55 = vpop.eup %1719 }
0x1765   :  { %v875_v56 = vmul.f32 %v1720_v55, %v873_v54  ;;  %vm880_vm14 = vweird.f32 %v1720_v55 }
0x1766   :  { %vm881_vm1 = vmor %vm879_vm15, %vm880_vm14 }
0x1767   :  { %v876_v57 = vsub.f32 1.0, %v875_v56 }
0x1769   :  { %v877_v58 = vmul.f32 %v1720_v55, %v876_v57 }
0x176b   :  { %v878_v59 = vadd.f32 %v1720_v55, %v877_v58 }
0x176d   :  { %v882_v62 = vsel %vm881_vm1, %v1720_v55, %v878_v59 }
0x176e   :  { %v887_v3 = vsel %vm884_vm2, %v886_v63, %v882_v62 }
0x176f   :  { %v890_v8 = vmul.f32 %v887_v3, %v837_v4 }
0x17cc   :  { %v893_v2 = vpop.permute.xlu1 %892 }
0x17cd   :  { %v895_v6 = vmul.f32 %v893_v2, %v887_v3 }
0x17cf   :  { %897 = vrot.lane.b32.xlu2 %v895_v6, %s1798_s27 }
0x1829   :  { %v898_v9 = vpop.permute.xlu2 %897 }
0x182a   :  { %v900_v10 = vadd.f32 %v898_v9, %v890_v8 }
0x182c   :  { %1721 = vtanh.f32 %v900_v10 }
0x1832   :  { %v1722_v11 = vpop.eup %1721 }
0x1833   :  { %903 = vrot.lane.b32.xlu0 %v1722_v11, %s1797_s26 }
0x18a5   :  { %v904_v12 = vpop.permute.xlu0 %903 }
0x18a6   :  { %v906_v13 = vmul.f32 %v904_v12, %v887_v3 }
0x18a8   :  { %908 = vrot.lane.b32.xlu1 %v906_v13, %s1798_s27  ;;  %v116_v13 = vld [vmem:[%s2292_s1 + $0x28] sm:$0xff] }
0x18a9   :  { %1562 = vmatmul.msk.f32.gmra.mxu1 %vm45_vm0, %v116_v13 }
0x191a   :  { %v2077_v19 = vpop.permute.xlu1 %908 }
0x191b   :  { %1590 = vmatmul.msk.f32.vlgmr.msrb.gmra.mxu3 %vm213_vm5, %v2077_v19 }
0x191c   :  { %1176 = vmatpush.msrb.mxu3 %v1996_v15 }
0x191e   :  { %1177 = vmatpush.msrb.mxu3 %v2001_v16 }
0x1920   :  { %1178 = vmatpush.msrb.mxu3 %v2008_v17 }
0x1922   :  { %1179 = vmatpush.msrb.mxu3 %v2017_v18 }
0x1926   :  { %v192_v20 = vpop.f32.mrf.mxu1 }
0x199e   :  { %v929_v23 = vpop.f32.mrf.mxu3 }
0x199f   :  { %v932_v24 = vadd.f32 %v929_v23, %v187_v21  ;;  %v193_v21 = vadd.f32 %v1981_v47, %v192_v20 }
0x19a1   :  { %1723 = vtanh.f32 %v932_v24  ;;  %v1591_v26 = vmul.f32 -1.442695, %v932_v24 }
0x19a3   :  { %1725 = vpow2.f32 %v1591_v26 }
0x19a7   :  { %v1724_v25 = vpop.eup %1723 }
0x19a8   :  { %955 = vrot.lane.b32.xlu2 %v1724_v25, %s1797_s26 }
0x19a9   :  { %v1726_v27 = vpop.eup %1725 }
0x19aa   :  { %v936_v28 = vadd.f32 1.0, %v1726_v27 }
0x19ac   :  { %1727 = vrcp.f32 %v936_v28  ;;  %v948_v33 = vand.u32 2147483648, %v936_v28  ;;  %vm942_vm4 = vweird.f32 %v936_v28  ;;  %v946_v34 = vand.u32 2147483647, %v936_v28 }
0x19ae   :  { %v949_v36 = vor.u32 1.1754944e-38, %v948_v33  ;;  %vm947_vm7 = vcmp.eq.f32.partialorder %v946_v34, 8.507059e+37 }
0x19b2   :  { %v1728_v29 = vpop.eup %1727 }
0x19b3   :  { %v938_v30 = vmul.f32 %v1728_v29, %v936_v28  ;;  %vm943_vm3 = vweird.f32 %v1728_v29 }
0x19b4   :  { %vm944_vm6 = vmor %vm942_vm4, %vm943_vm3 }
0x19b5   :  { %v939_v31 = vsub.f32 1.0, %v938_v30 }
0x19b7   :  { %v940_v32 = vmul.f32 %v1728_v29, %v939_v31 }
0x19b9   :  { %v941_v7 = vadd.f32 %v1728_v29, %v940_v32 }
0x19bb   :  { %v945_v35 = vsel %vm944_vm6, %v1728_v29, %v941_v7 }
0x19bc   :  { %v950_v38 = vsel %vm947_vm7, %v949_v36, %v945_v35 }
0x19bd   :  { %v953_v40 = vmul.f32 %v950_v38, %v900_v10 }
0x1a02   :  { %v956_v37 = vpop.permute.xlu2 %955 }
0x1a03   :  { %v958_v39 = vmul.f32 %v956_v37, %v950_v38 }
0x1a05   :  { %960 = vrot.lane.b32.xlu0 %v958_v39, %s1798_s27 }
0x1a77   :  { %v961_v0 = vpop.permute.xlu0 %960 }
0x1a78   :  { %v963_v1 = vadd.f32 %v961_v0, %v953_v40 }
0x1a7a   :  { %1729 = vtanh.f32 %v963_v1 }
0x1a80   :  { %v1730_v41 = vpop.eup %1729 }
0x1a81   :  { %966 = vrot.lane.b32.xlu1 %v1730_v41, %s1797_s26 }
0x1af3   :  { %v967_v4 = vpop.permute.xlu1 %966 }
0x1af4   :  { %v969_v42 = vmul.f32 %v967_v4, %v950_v38 }
0x1af6   :  { %971 = vrot.lane.b32.xlu2 %v969_v42, %s1798_s27 }
0x1b50   :  { %v2094_v43 = vpop.permute.xlu2 %971 }
0x1b51   :  { %1592 = vmatmul.msk.f32.vlgmr.msra.gmra.mxu2 %vm213_vm5, %v2094_v43 }
0x1b52   :  { %1302 = vmatpush.msra.mxu2 %v1996_v15 }
0x1b54   :  { %1303 = vmatpush.msra.mxu2 %v2001_v16 }
0x1b56   :  { %1304 = vmatpush.msra.mxu2 %v2008_v17 }
0x1b58   :  { %1305 = vmatpush.msra.mxu2 %v2017_v18 }
0x1bd4   :  { %v992_v48 = vpop.f32.mrf.mxu2 }
0x1bd5   :  { %v995_v49 = vadd.f32 %v992_v48, %v190_v46 }
0x1bd7   :  { %1731 = vtanh.f32 %v995_v49  ;;  %v1593_v51 = vmul.f32 -1.442695, %v995_v49 }
0x1bd9   :  { %1733 = vpow2.f32 %v1593_v51 }
0x1bdd   :  { %v1732_v50 = vpop.eup %1731 }
0x1bde   :  { %1018 = vrot.lane.b32.xlu0 %v1732_v50, %s1797_s26 }
0x1bdf   :  { %v1734_v52 = vpop.eup %1733 }
0x1be0   :  { %v999_v53 = vadd.f32 1.0, %v1734_v52 }
0x1be2   :  { %1735 = vrcp.f32 %v999_v53  ;;  %v1011_v59 = vand.u32 2147483648, %v999_v53  ;;  %vm1005_vm9 = vweird.f32 %v999_v53  ;;  %v1009_v60 = vand.u32 2147483647, %v999_v53 }
0x1be4   :  { %v1012_v62 = vor.u32 1.1754944e-38, %v1011_v59  ;;  %vm1010_vm11 = vcmp.eq.f32.partialorder %v1009_v60, 8.507059e+37 }
0x1be8   :  { %v1736_v54 = vpop.eup %1735 }
0x1be9   :  { %v1001_v55 = vmul.f32 %v1736_v54, %v999_v53  ;;  %vm1006_vm8 = vweird.f32 %v1736_v54 }
0x1bea   :  { %vm1007_vm10 = vmor %vm1005_vm9, %vm1006_vm8 }
0x1beb   :  { %v1002_v56 = vsub.f32 1.0, %v1001_v55 }
0x1bed   :  { %v1003_v57 = vmul.f32 %v1736_v54, %v1002_v56 }
0x1bef   :  { %v1004_v58 = vadd.f32 %v1736_v54, %v1003_v57 }
0x1bf1   :  { %v1008_v61 = vsel %vm1007_vm10, %v1736_v54, %v1004_v58 }
0x1bf2   :  { %v1013_v2 = vsel %vm1010_vm11, %v1012_v62, %v1008_v61 }
0x1bf3   :  { %v1016_v6 = vmul.f32 %v1013_v2, %v963_v1  ;;  %v117_v1 = vld [vmem:[%s2292_s1 + $0x30] sm:$0xff] }
0x1bf4   :  { %1563 = vmatmul.msk.f32.gmra.mxu1 %vm45_vm0, %v117_v1 }
0x1c50   :  { %v1019_v63 = vpop.permute.xlu0 %1018 }
0x1c51   :  { %v1021_v3 = vmul.f32 %v1019_v63, %v1013_v2 }
0x1c53   :  { %1023 = vrot.lane.b32.xlu1 %v1021_v3, %s1798_s27 }
0x1c71   :  { %v195_v4 = vpop.f32.mrf.mxu1 }
0x1c72   :  { %v196_v42 = vadd.f32 %v1981_v47, %v195_v4 }
0x1cc5   :  { %v1024_v8 = vpop.permute.xlu1 %1023 }
0x1cc6   :  { %v1026_v9 = vadd.f32 %v1024_v8, %v1016_v6 }
0x1cc8   :  { %1737 = vtanh.f32 %v1026_v9 }
0x1cce   :  { %v1738_v10 = vpop.eup %1737 }
0x1ccf   :  { %1029 = vrot.lane.b32.xlu2 %v1738_v10, %s1797_s26  ;;  %v118_v10 = vld [vmem:[%s2292_s1 + $0x38] sm:$0xff] }
0x1cd0   :  { %1564 = vmatmul.msk.f32.gmra.mxu1 %vm45_vm0, %v118_v10 }
0x1d29   :  { %v1030_v11 = vpop.permute.xlu2 %1029 }
0x1d2a   :  { %v1032_v12 = vmul.f32 %v1030_v11, %v1013_v2 }
0x1d2c   :  { %1034 = vrot.lane.b32.xlu0 %v1032_v12, %s1798_s27 }
0x1d4d   :  { %v198_v12 = vpop.f32.mrf.mxu1 }
0x1d4e   :  { %v199_v13 = vadd.f32 %v1981_v47, %v198_v12 }
0x1d9e   :  { %v2111_v14 = vpop.permute.xlu0 %1034 }
0x1d9f   :  { %1594 = vmatmul.msk.f32.vlgmr.msra.gmra.mxu3 %vm213_vm5, %v2111_v14 }
0x1da0   :  { %1365 = vmatpush.msra.mxu3 %v1996_v15 }
0x1da2   :  { %1366 = vmatpush.msra.mxu3 %v2001_v16 }
0x1da4   :  { %1367 = vmatpush.msra.mxu3 %v2008_v17 }
0x1da6   :  { %1368 = vmatpush.msra.mxu3 %v2017_v18 }
0x1e22   :  { %v1055_v23 = vpop.f32.mrf.mxu3 }
0x1e23   :  { %v1058_v24 = vadd.f32 %v1055_v23, %v193_v21 }
0x1e25   :  { %1739 = vtanh.f32 %v1058_v24  ;;  %v1595_v26 = vmul.f32 -1.442695, %v1058_v24 }
0x1e27   :  { %1741 = vpow2.f32 %v1595_v26 }
0x1e2b   :  { %v1740_v25 = vpop.eup %1739 }
0x1e2c   :  { %1081 = vrot.lane.b32.xlu1 %v1740_v25, %s1797_s26 }
0x1e2d   :  { %v1742_v27 = vpop.eup %1741 }
0x1e2e   :  { %v1062_v28 = vadd.f32 1.0, %v1742_v27 }
0x1e30   :  { %1743 = vrcp.f32 %v1062_v28  ;;  %v1074_v18 = vand.u32 2147483648, %v1062_v28  ;;  %vm1068_vm13 = vweird.f32 %v1062_v28  ;;  %v1072_v31 = vand.u32 2147483647, %v1062_v28 }
0x1e32   :  { %v1075_v7 = vor.u32 1.1754944e-38, %v1074_v18  ;;  %vm1073_vm15 = vcmp.eq.f32.partialorder %v1072_v31, 8.507059e+37 }
0x1e36   :  { %v1744_v15 = vpop.eup %1743 }
0x1e37   :  { %v1064_v16 = vmul.f32 %v1744_v15, %v1062_v28  ;;  %vm1069_vm12 = vweird.f32 %v1744_v15 }
0x1e38   :  { %vm1070_vm14 = vmor %vm1068_vm13, %vm1069_vm12 }
0x1e39   :  { %v1065_v29 = vsub.f32 1.0, %v1064_v16 }
0x1e3b   :  { %v1066_v17 = vmul.f32 %v1744_v15, %v1065_v29 }
0x1e3d   :  { %v1067_v30 = vadd.f32 %v1744_v15, %v1066_v17 }
0x1e3f   :  { %v1071_v32 = vsel %vm1070_vm14, %v1744_v15, %v1067_v30 }
0x1e40   :  { %v1076_v34 = vsel %vm1073_vm15, %v1075_v7, %v1071_v32 }
0x1e41   :  { %v1079_v36 = vmul.f32 %v1076_v34, %v1026_v9 }
0x1e9e   :  { %v1082_v33 = vpop.permute.xlu1 %1081 }
0x1e9f   :  { %v1084_v35 = vmul.f32 %v1082_v33, %v1076_v34 }
0x1ea1   :  { %1086 = vrot.lane.b32.xlu2 %v1084_v35, %s1798_s27 }
0x1efb   :  { %v1087_v37 = vpop.permute.xlu2 %1086 }
0x1efc   :  { %v1089_v38 = vadd.f32 %v1087_v37, %v1079_v36 }
0x1efe   :  { %1745 = vtanh.f32 %v1089_v38 }
0x1f04   :  { %v1746_v39 = vpop.eup %1745 }
0x1f05   :  { %1092 = vrot.lane.b32.xlu0 %v1746_v39, %s1797_s26  ;;  %v120_v39 = vld [vmem:[%s2292_s1 + $0x48] sm:$0xff] }
0x1f77   :  { %v1093_v40 = vpop.permute.xlu0 %1092 }
0x1f78   :  { %v1095_v0 = vmul.f32 %v1093_v40, %v1076_v34  ;;  %v121_v40 = vld [vmem:[%s2292_s1 + $0x50] sm:$0xff] }
0x1f7a   :  { %1097 = vrot.lane.b32.xlu1 %v1095_v0, %s1798_s27  ;;  %v122_v0 = vld [vmem:[%s2292_s1 + $0x58] sm:$0xff] }
0x1fec   :  { %v2128_v41 = vpop.permute.xlu1 %1097 }
0x1fed   :  { %1596 = vmatmul.msk.f32.vlgmr.msrb.gmra.mxu2 %vm213_vm5, %v2128_v41 }
0x2070   :  { %v1118_v5 = vpop.f32.mrf.mxu2 }
0x2071   :  { %v1121_v44 = vadd.f32 %v1118_v5, %v196_v42 }
0x2073   :  { %1747 = vtanh.f32 %v1121_v44  ;;  %v1597_v48 = vmul.f32 -1.442695, %v1121_v44 }
0x2075   :  { %1749 = vpow2.f32 %v1597_v48 }
0x2079   :  { %v1748_v46 = vpop.eup %1747 }
0x207a   :  { %1144 = vrot.lane.b32.xlu2 %v1748_v46, %s1797_s26 }
0x207b   :  { %v1750_v49 = vpop.eup %1749 }
0x207c   :  { %v1125_v50 = vadd.f32 1.0, %v1750_v49 }
0x207e   :  { %1751 = vrcp.f32 %v1125_v50  ;;  %v1137_v56 = vand.u32 2147483648, %v1125_v50  ;;  %vm1131_vm2 = vweird.f32 %v1125_v50  ;;  %v1135_v57 = vand.u32 2147483647, %v1125_v50 }
0x2080   :  { %v1138_v59 = vor.u32 1.1754944e-38, %v1137_v56  ;;  %vm1136_vm4 = vcmp.eq.f32.partialorder %v1135_v57, 8.507059e+37 }
0x2084   :  { %v1752_v51 = vpop.eup %1751 }
0x2085   :  { %v1127_v52 = vmul.f32 %v1752_v51, %v1125_v50  ;;  %vm1132_vm1 = vweird.f32 %v1752_v51 }
0x2086   :  { %vm1133_vm3 = vmor %vm1131_vm2, %vm1132_vm1 }
0x2087   :  { %v1128_v53 = vsub.f32 1.0, %v1127_v52 }
0x2089   :  { %v1129_v54 = vmul.f32 %v1752_v51, %v1128_v53 }
0x208b   :  { %v1130_v55 = vadd.f32 %v1752_v51, %v1129_v54 }
0x208d   :  { %v1134_v58 = vsel %vm1133_vm3, %v1752_v51, %v1130_v55 }
0x208e   :  { %v1139_v61 = vsel %vm1136_vm4, %v1138_v59, %v1134_v58 }
0x208f   :  { %v1142_v63 = vmul.f32 %v1139_v61, %v1089_v38  ;;  %v119_v38 = vld [vmem:[%s2292_s1 + $0x40] sm:$0xff] }
0x2090   :  { %1565 = vmatmul.msk.f32.gmra.mxu1 %vm45_vm0, %v119_v38 }
0x2098   :  { %1566 = vmatmul.msk.f32.gmra.mxu1 %vm45_vm0, %v120_v39 }
0x20a0   :  { %1567 = vmatmul.msk.f32.gmra.mxu1 %vm45_vm0, %v121_v40 }
0x20a8   :  { %1568 = vmatmul.msk.f32.gmra.mxu1 %vm45_vm0, %v122_v0 }
0x20d4   :  { %v1145_v60 = vpop.permute.xlu2 %1144 }
0x20d5   :  { %v1147_v62 = vmul.f32 %v1145_v60, %v1139_v61 }
0x20d7   :  { %1149 = vrot.lane.b32.xlu0 %v1147_v62, %s1798_s27 }
0x210d   :  { %v201_v5 = vpop.f32.mrf.mxu1 }
0x210e   :  { %v202_v49 = vadd.f32 %v1981_v47, %v201_v5 }
0x2115   :  { %v204_v44 = vpop.f32.mrf.mxu1 }
0x211d   :  { %v2170_v46 = vpop.f32.mrf.mxu1 }
0x2125   :  { %v2172_v48 = vpop.f32.mrf.mxu1 }
0x2149   :  { %v1150_v2 = vpop.permute.xlu0 %1149 }
0x214a   :  { %v1152_v3 = vadd.f32 %v1150_v2, %v1142_v63 }
0x214c   :  { %1753 = vtanh.f32 %v1152_v3 }
0x2152   :  { %v1754_v6 = vpop.eup %1753 }
0x2153   :  { %1155 = vrot.lane.b32.xlu1 %v1754_v6, %s1797_s26 }
0x21c5   :  { %v1156_v8 = vpop.permute.xlu1 %1155 }
0x21c6   :  { %v1158_v9 = vmul.f32 %v1156_v8, %v1139_v61 }
0x21c8   :  { %1160 = vrot.lane.b32.xlu2 %v1158_v9, %s1798_s27 }
0x2222   :  { %v2141_v11 = vpop.permute.xlu2 %1160 }
0x2223   :  { %1598 = vmatmul.msk.f32.vlgmr.msrb.gmra.mxu3 %vm213_vm5, %v2141_v11 }
0x22a6   :  { %v1181_v20 = vpop.f32.mrf.mxu3 }
0x22a7   :  { %v1184_v21 = vadd.f32 %v1181_v20, %v199_v13 }
0x22a9   :  { %1755 = vtanh.f32 %v1184_v21  ;;  %v1599_v24 = vmul.f32 -1.442695, %v1184_v21 }
0x22ab   :  { %1757 = vpow2.f32 %v1599_v24  ;;  %v30_v24 = vld [vmem:[%s2290_s2 + $0x80] sm:$0xff] }
0x22af   :  { %v1756_v23 = vpop.eup %1755 }
0x22b0   :  { %1207 = vrot.lane.b32.xlu0 %v1756_v23, %s1797_s26  ;;  %v31_v23 = vld [vmem:[%s2290_s2 + $0x88] sm:$0xff] }
0x22b1   :  { %v1758_v25 = vpop.eup %1757  ;;  %1620 = vmatpush.msrb.mxu2 %v31_v23  ;;  %1621 = vmatpush.msrb.mxu3 %v31_v23 }
0x22b2   :  { %v1188_v26 = vadd.f32 1.0, %v1758_v25  ;;  %v29_v25 = vld [vmem:[%s2290_s2 + $0x78] sm:$0xff]  ;;  %1492 = vmatpush.msra.mxu0 %v31_v23 }
0x22b3   :  { %1622 = vmatpush.msrb.mxu2 %v30_v24  ;;  %1623 = vmatpush.msrb.mxu3 %v30_v24 }
0x22b4   :  { %1759 = vrcp.f32 %v1188_v26  ;;  %v1200_v17 = vand.u32 2147483648, %v1188_v26  ;;  %vm1194_vm7 = vweird.f32 %v1188_v26  ;;  %v1198_v30 = vand.u32 2147483647, %v1188_v26  ;;  %1493 = vmatpush.msra.mxu0 %v30_v24 }
0x22b5   :  { %1624 = vmatpush.msrb.mxu2 %v29_v25  ;;  %1625 = vmatpush.msrb.mxu3 %v29_v25 }
0x22b6   :  { %v1201_v31 = vor.u32 1.1754944e-38, %v1200_v17  ;;  %vm1199_vm9 = vcmp.eq.f32.partialorder %v1198_v30, 8.507059e+37  ;;  %1494 = vmatpush.msra.mxu0 %v29_v25 }
0x22ba   :  { %v1760_v27 = vpop.eup %1759 }
0x22bb   :  { %v1190_v28 = vmul.f32 %v1760_v27, %v1188_v26  ;;  %vm1195_vm6 = vweird.f32 %v1760_v27  ;;  %v28_v26 = vld [vmem:[%s2290_s2 + $0x70] sm:$0xff] }
0x22bc   :  { %vm1196_vm8 = vmor %vm1194_vm7, %vm1195_vm6  ;;  %1626 = vmatpush.msrb.mxu2 %v28_v26  ;;  %1627 = vmatpush.msrb.mxu3 %v28_v26 }
0x22bd   :  { %v1191_v15 = vsub.f32 1.0, %v1190_v28  ;;  %1495 = vmatpush.msra.mxu0 %v28_v26  ;;  %v205_v28 = vadd.f32 %v1981_v47, %v204_v44 }
0x22bf   :  { %v1192_v16 = vmul.f32 %v1760_v27, %v1191_v15 }
0x22c1   :  { %v1193_v29 = vadd.f32 %v1760_v27, %v1192_v16 }
0x22c3   :  { %v1197_v18 = vsel %vm1196_vm8, %v1760_v27, %v1193_v29  ;;  %v2207_v29 = vld [vmem:[%s2290_s2 + $0x93] ss:$0 sm:$0xff] }
0x22c4   :  { %v1202_v7 = vsel %vm1199_vm9, %v1201_v31, %v1197_v18 }
0x22c5   :  { %v1205_v34 = vmul.f32 %v1202_v7, %v1152_v3 }
0x2322   :  { %v1208_v32 = vpop.permute.xlu0 %1207 }
0x2323   :  { %v1210_v33 = vmul.f32 %v1208_v32, %v1202_v7 }
0x2325   :  { %1212 = vrot.lane.b32.xlu1 %v1210_v33, %s1798_s27 }
0x2397   :  { %v1213_v35 = vpop.permute.xlu1 %1212 }
0x2398   :  { %v1215_v36 = vadd.f32 %v1213_v35, %v1205_v34 }
0x239a   :  { %1761 = vtanh.f32 %v1215_v36 }
0x23a0   :  { %v1762_v37 = vpop.eup %1761 }
0x23a1   :  { %1218 = vrot.lane.b32.xlu2 %v1762_v37, %s1797_s26 }
0x23fb   :  { %v1219_v1 = vpop.permute.xlu2 %1218 }
0x23fc   :  { %v1221_v4 = vmul.f32 %v1219_v1, %v1202_v7 }
0x23fe   :  { %1223 = vrot.lane.b32.xlu0 %v1221_v4, %s1798_s27 }
0x2470   :  { %v2166_v42 = vpop.permute.xlu0 %1223 }
0x2471   :  { %1600 = vmatmul.msk.f32.vlgmr.msrb.gmra.mxu1 %vm213_vm5, %v2166_v42 }
0x24ee   :  { %v1244_v50 = vpop.f32.mrf.mxu1 }
0x24ef   :  { %v1247_v51 = vadd.f32 %v1244_v50, %v202_v49 }
0x24f1   :  { %1763 = vtanh.f32 %v1247_v51  ;;  %v1601_v53 = vmul.f32 -1.442695, %v1247_v51 }
0x24f3   :  { %1765 = vpow2.f32 %v1601_v53 }
0x24f7   :  { %v1764_v52 = vpop.eup %1763 }
0x24f8   :  { %1270 = vrot.lane.b32.xlu1 %v1764_v52, %s1797_s26 }
0x24f9   :  { %v1766_v54 = vpop.eup %1765 }
0x24fa   :  { %v1251_v55 = vadd.f32 1.0, %v1766_v54 }
0x24fc   :  { %1767 = vrcp.f32 %v1251_v55  ;;  %v1263_v61 = vand.u32 2147483648, %v1251_v55  ;;  %vm1257_vm10 = vweird.f32 %v1251_v55  ;;  %v1261_v62 = vand.u32 2147483647, %v1251_v55 }
0x24fe   :  { %v1264_v2 = vor.u32 1.1754944e-38, %v1263_v61  ;;  %vm1262_vm12 = vcmp.eq.f32.partialorder %v1261_v62, 8.507059e+37 }
0x2502   :  { %v1768_v56 = vpop.eup %1767 }
0x2503   :  { %v1253_v57 = vmul.f32 %v1768_v56, %v1251_v55  ;;  %vm1258_vm0 = vweird.f32 %v1768_v56 }
0x2504   :  { %vm1259_vm11 = vmor %vm1257_vm10, %vm1258_vm0 }
0x2505   :  { %v1254_v58 = vsub.f32 1.0, %v1253_v57  ;;  %v208_v57 = vadd.f32 %v1981_v47, %v2170_v46 }
0x2507   :  { %v1255_v59 = vmul.f32 %v1768_v56, %v1254_v58 }
0x2509   :  { %v1256_v60 = vadd.f32 %v1768_v56, %v1255_v59 }
0x250b   :  { %v1260_v63 = vsel %vm1259_vm11, %v1768_v56, %v1256_v60 }
0x250c   :  { %v1265_v6 = vsel %vm1262_vm12, %v1264_v2, %v1260_v63 }
0x250d   :  { %v1268_v9 = vmul.f32 %v1265_v6, %v1215_v36 }
0x256a   :  { %v1271_v3 = vpop.permute.xlu1 %1270 }
0x256b   :  { %v1273_v8 = vmul.f32 %v1271_v3, %v1265_v6 }
0x256d   :  { %1275 = vrot.lane.b32.xlu2 %v1273_v8, %s1798_s27 }
0x25c7   :  { %v1276_v10 = vpop.permute.xlu2 %1275 }
0x25c8   :  { %v2177_v12 = vadd.f32 %v1276_v10, %v1268_v9 }
0x25ca   :  { %1769 = vtanh.f32 %v2177_v12 }
0x25d0   :  { %v1770_v13 = vpop.eup %1769 }
0x25d1   :  { %1281 = vrot.lane.b32.xlu0 %v1770_v13, %s1797_s26 }
0x2643   :  { %v1282_v20 = vpop.permute.xlu0 %1281 }
0x2644   :  { %v1284_v21 = vmul.f32 %v1282_v20, %v1265_v6 }
0x2646   :  { %1286 = vrot.lane.b32.xlu1 %v1284_v21, %s1798_s27 }
0x26b8   :  { %v1287_v27 = vpop.permute.xlu1 %1286 }
0x26b9   :  { %1602 = vmatmul.msk.f32.vlgmr.msra.gmra.mxu2 %vm213_vm5, %v1287_v27 }
0x26c1   :  { %1612 = vmatmul.msk.f32.vlgmr.msrb.gmra.mxu2 %vm213_vm5, %v2111_v14 }
0x26c9   :  { %1613 = vmatmul.msk.f32.gmra.mxu2 %vm213_vm5, %v2128_v41 }
0x26d1   :  { %1614 = vmatmul.msk.f32.gmra.mxu2 %vm213_vm5, %v2141_v11 }
0x26d9   :  { %1615 = vmatmul.msk.f32.gmra.mxu2 %vm213_vm5, %v2166_v42 }
0x273c   :  { %v1307_v15 = vpop.f32.mrf.mxu2 }
0x273d   :  { %v1310_v16 = vadd.f32 %v1307_v15, %v205_v28 }
0x273f   :  { %1771 = vtanh.f32 %v1310_v16  ;;  %v1603_v33 = vmul.f32 -1.442695, %v1310_v16 }
0x2741   :  { %1773 = vpow2.f32 %v1603_v33 }
0x2744   :  { %v1509_v14 = vpop.f32.mrf.mxu2 }
0x2745   :  { %v1772_v17 = vpop.eup %1771  ;;  %v1510_v41 = vadd.f32 %v2207_v29, %v1509_v14 }
0x2746   :  { %1333 = vrot.lane.b32.xlu2 %v1772_v17, %s1797_s26 }
0x2747   :  { %1537 = vst [vmem:[%s2293_s3 + $0x20] sm:$0xff] %v1510_v41  ;;  %v1774_v34 = vpop.eup %1773 }
0x2748   :  { %v1314_v35 = vadd.f32 1.0, %v1774_v34 }
0x274a   :  { %1775 = vrcp.f32 %v1314_v35  ;;  %v1326_v0 = vand.u32 2147483648, %v1314_v35  ;;  %vm1320_vm14 = vweird.f32 %v1314_v35  ;;  %v1324_v1 = vand.u32 2147483647, %v1314_v35 }
0x274c   :  { %v1512_v11 = vpop.f32.mrf.mxu2  ;;  %v1327_v42 = vor.u32 1.1754944e-38, %v1326_v0  ;;  %vm1325_vm1 = vcmp.eq.f32.partialorder %v1324_v1, 8.507059e+37 }
0x274d   :  { %v1513_v30 = vadd.f32 %v2207_v29, %v1512_v11  ;;  %v1795_v11 = vld [vmem:[%s2290_s2 + $0x91] ss:$0 sm:$0xff] }
0x274f   :  { %1538 = vst [vmem:[%s2293_s3 + $0x28] sm:$0xff] %v1513_v30  ;;  %v211_v30 = vadd.f32 %v1795_v11, %v2172_v48 }
0x2750   :  { %v1776_v36 = vpop.eup %1775 }
0x2751   :  { %v1316_v37 = vmul.f32 %v1776_v36, %v1314_v35  ;;  %vm1321_vm13 = vweird.f32 %v1776_v36 }
0x2752   :  { %vm1322_vm15 = vmor %vm1320_vm14, %vm1321_vm13 }
0x2753   :  { %v1317_v38 = vsub.f32 1.0, %v1316_v37 }
0x2754   :  { %v1515_v18 = vpop.f32.mrf.mxu2 }
0x2755   :  { %v1516_v31 = vadd.f32 %v2207_v29, %v1515_v18  ;;  %v1318_v39 = vmul.f32 %v1776_v36, %v1317_v38 }
0x2757   :  { %1539 = vst [vmem:[%s2293_s3 + $0x30] sm:$0xff] %v1516_v31  ;;  %v1319_v40 = vadd.f32 %v1776_v36, %v1318_v39 }
0x2759   :  { %v1323_v4 = vsel %vm1322_vm15, %v1776_v36, %v1319_v40 }
0x275a   :  { %v1328_v44 = vsel %vm1325_vm1, %v1327_v42, %v1323_v4 }
0x275b   :  { %v1331_v50 = vmul.f32 %v1328_v44, %v2177_v12 }
0x275c   :  { %v1518_v32 = vpop.f32.mrf.mxu2 }
0x275d   :  { %v1519_v7 = vadd.f32 %v2207_v29, %v1518_v32 }
0x275f   :  { %1540 = vst [vmem:[%s2293_s3 + $0x38] sm:$0xff] %v1519_v7 }
0x27a0   :  { %v1334_v5 = vpop.permute.xlu2 %1333 }
0x27a1   :  { %v1336_v49 = vmul.f32 %v1334_v5, %v1328_v44 }
0x27a3   :  { %1338 = vrot.lane.b32.xlu0 %v1336_v49, %s1798_s27 }
0x2815   :  { %v1339_v51 = vpop.permute.xlu0 %1338 }
0x2816   :  { %v1341_v52 = vadd.f32 %v1339_v51, %v1331_v50 }
0x2818   :  { %1777 = vtanh.f32 %v1341_v52 }
0x281e   :  { %v1778_v53 = vpop.eup %1777 }
0x281f   :  { %1344 = vrot.lane.b32.xlu1 %v1778_v53, %s1797_s26 }
0x2891   :  { %v1345_v54 = vpop.permute.xlu1 %1344 }
0x2892   :  { %v1347_v55 = vmul.f32 %v1345_v54, %v1328_v44 }
0x2894   :  { %1349 = vrot.lane.b32.xlu2 %v1347_v55, %s1798_s27 }
0x28ee   :  { %v1350_v56 = vpop.permute.xlu2 %1349 }
0x28ef   :  { %1604 = vmatmul.msk.f32.vlgmr.msra.gmra.mxu3 %vm213_vm5, %v1350_v56 }
0x28f7   :  { %1616 = vmatmul.msk.f32.vlgmr.msrb.gmra.mxu3 %vm213_vm5, %v1287_v27 }
0x28ff   :  { %1617 = vmatmul.msk.f32.gmra.mxu3 %vm213_vm5, %v1350_v56 }
0x2972   :  { %v1370_v58 = vpop.f32.mrf.mxu3 }
0x2973   :  { %v1373_v59 = vadd.f32 %v1370_v58, %v208_v57 }
0x2975   :  { %1779 = vtanh.f32 %v1373_v59  ;;  %v1605_v47 = vmul.f32 -1.442695, %v1373_v59 }
0x2977   :  { %1781 = vpow2.f32 %v1605_v47 }
0x297a   :  { %v1521_v60 = vpop.f32.mrf.mxu3 }
0x297b   :  { %v1780_v61 = vpop.eup %1779  ;;  %v1522_v62 = vadd.f32 %v2207_v29, %v1521_v60 }
0x297c   :  { %1396 = vrot.lane.b32.xlu0 %v1780_v61, %s1797_s26 }
0x297d   :  { %1541 = vst [vmem:[%s2293_s3 + $0x40] sm:$0xff] %v1522_v62  ;;  %v1782_v46 = vpop.eup %1781 }
0x297e   :  { %v1377_v3 = vadd.f32 1.0, %v1782_v46 }
0x2980   :  { %1783 = vrcp.f32 %v1377_v3  ;;  %v1389_v13 = vand.u32 2147483648, %v1377_v3  ;;  %vm1383_vm3 = vweird.f32 %v1377_v3  ;;  %v1387_v20 = vand.u32 2147483647, %v1377_v3 }
0x2982   :  { %v1524_v63 = vpop.f32.mrf.mxu3  ;;  %v1390_v23 = vor.u32 1.1754944e-38, %v1389_v13  ;;  %vm1388_vm6 = vcmp.eq.f32.partialorder %v1387_v20, 8.507059e+37 }
0x2983   :  { %v1525_v2 = vadd.f32 %v2207_v29, %v1524_v63 }
0x2985   :  { %1542 = vst [vmem:[%s2293_s3 + $0x48] sm:$0xff] %v1525_v2 }
0x2986   :  { %v1784_v6 = vpop.eup %1783 }
0x2987   :  { %v1379_v8 = vmul.f32 %v1784_v6, %v1377_v3  ;;  %vm1384_vm2 = vweird.f32 %v1784_v6 }
0x2988   :  { %vm1385_vm4 = vmor %vm1383_vm3, %vm1384_vm2 }
0x2989   :  { %v1380_v9 = vsub.f32 1.0, %v1379_v8 }
0x298b   :  { %v1381_v10 = vmul.f32 %v1784_v6, %v1380_v9 }
0x298d   :  { %v1382_v12 = vadd.f32 %v1784_v6, %v1381_v10 }
0x298f   :  { %v1386_v21 = vsel %vm1385_vm4, %v1784_v6, %v1382_v12 }
0x2990   :  { %v1391_v25 = vsel %vm1388_vm6, %v1390_v23, %v1386_v21 }
0x2991   :  { %v1394_v27 = vmul.f32 %v1391_v25, %v1341_v52 }
0x29ee   :  { %v1397_v24 = vpop.permute.xlu0 %1396 }
0x29ef   :  { %v1399_v26 = vmul.f32 %v1397_v24, %v1391_v25 }
0x29f1   :  { %1401 = vrot.lane.b32.xlu1 %v1399_v26, %s1798_s27 }
0x2a63   :  { %v1402_v28 = vpop.permute.xlu1 %1401 }
0x2a64   :  { %v1404_v15 = vadd.f32 %v1402_v28, %v1394_v27 }
0x2a66   :  { %1785 = vtanh.f32 %v1404_v15 }
0x2a6c   :  { %v1786_v16 = vpop.eup %1785 }
0x2a6d   :  { %1407 = vrot.lane.b32.xlu2 %v1786_v16, %s1797_s26 }
0x2ac7   :  { %v1408_v14 = vpop.permute.xlu2 %1407 }
0x2ac8   :  { %v1410_v17 = vmul.f32 %v1408_v14, %v1391_v25 }
0x2aca   :  { %1412 = vrot.lane.b32.xlu0 %v1410_v17, %s1798_s27 }
0x2b3c   :  { %v1413_v41 = vpop.permute.xlu0 %1412 }
0x2b3d   :  { %1606 = vmatmul.msk.f32.vlgmr.msrb.gmra.mxu0 %vm213_vm5, %v1413_v41  ;;  %1618 = vmatmul.msk.f32.gmra.mxu3 %vm213_vm5, %v1413_v41 }
0x2b45   :  { %1608 = vmatmul.msk.f32.vlgmr.msra.gmra.mxu0 %vm213_vm5, %v2042_v22 }
0x2b4d   :  { %1609 = vmatmul.msk.f32.gmra.mxu0 %vm213_vm5, %v2060_v45 }
0x2b55   :  { %1610 = vmatmul.msk.f32.gmra.mxu0 %vm213_vm5, %v2077_v19 }
0x2b5d   :  { %1611 = vmatmul.msk.f32.gmra.mxu0 %vm213_vm5, %v2094_v43 }
0x2bba   :  { %v1433_v18 = vpop.f32.mrf.mxu0 }
0x2bbb   :  { %v1436_v31 = vadd.f32 %v1433_v18, %v211_v30 }
0x2bbd   :  { %1787 = vtanh.f32 %v1436_v31  ;;  %v1607_v37 = vmul.f32 -1.442695, %v1436_v31 }
0x2bbf   :  { %1789 = vpow2.f32 %v1607_v37 }
0x2bc0   :  { %v1527_v32 = vpop.f32.mrf.mxu3 }
0x2bc1   :  { %v1528_v22 = vadd.f32 %v2207_v29, %v1527_v32 }
0x2bc2   :  { %v1497_v7 = vpop.f32.mrf.mxu0 }
0x2bc3   :  { %v1788_v45 = vpop.eup %1787  ;;  %1543 = vst [vmem:[%s2293_s3 + $0x50] sm:$0xff] %v1528_v22  ;;  %v1498_v19 = vadd.f32 %v2207_v29, %v1497_v7 }
0x2bc4   :  { %1459 = vrot.lane.b32.xlu1 %v1788_v45, %s1797_s26 }
0x2bc5   :  { %1533 = vst [vmem:[%s2293_s3] sm:$0xff] %v1498_v19  ;;  %v1790_v38 = vpop.eup %1789 }
0x2bc6   :  { %v1440_v39 = vadd.f32 1.0, %v1790_v38 }
0x2bc8   :  { %1791 = vrcp.f32 %v1440_v39  ;;  %v1452_v5 = vand.u32 2147483648, %v1440_v39  ;;  %vm1446_vm8 = vweird.f32 %v1440_v39  ;;  %v1450_v44 = vand.u32 2147483647, %v1440_v39 }
0x2bca   :  { %v1500_v43 = vpop.f32.mrf.mxu0  ;;  %v1453_v50 = vor.u32 1.1754944e-38, %v1452_v5  ;;  %vm1451_vm0 = vcmp.eq.f32.partialorder %v1450_v44, 8.507059e+37 }
0x2bcb   :  { %v1501_v48 = vadd.f32 %v2207_v29, %v1500_v43 }
0x2bcd   :  { %1534 = vst [vmem:[%s2293_s3 + $0x8] sm:$0xff] %v1501_v48 }
0x2bce   :  { %v1792_v40 = vpop.eup %1791 }
0x2bcf   :  { %v1442_v0 = vmul.f32 %v1792_v40, %v1440_v39  ;;  %vm1447_vm7 = vweird.f32 %v1792_v40 }
0x2bd0   :  { %vm1448_vm9 = vmor %vm1446_vm8, %vm1447_vm7 }
0x2bd1   :  { %v1443_v1 = vsub.f32 1.0, %v1442_v0 }
0x2bd2   :  { %v1503_v33 = vpop.f32.mrf.mxu0 }
0x2bd3   :  { %v1504_v34 = vadd.f32 %v2207_v29, %v1503_v33  ;;  %v1444_v4 = vmul.f32 %v1792_v40, %v1443_v1 }
0x2bd5   :  { %1535 = vst [vmem:[%s2293_s3 + $0x10] sm:$0xff] %v1504_v34  ;;  %v1445_v42 = vadd.f32 %v1792_v40, %v1444_v4 }
0x2bd7   :  { %v1449_v49 = vsel %vm1448_vm9, %v1792_v40, %v1445_v42 }
0x2bd8   :  { %v1454_v52 = vsel %vm1451_vm0, %v1453_v50, %v1449_v49 }
0x2bd9   :  { %v1457_v54 = vmul.f32 %v1454_v52, %v1404_v15 }
0x2bda   :  { %v1506_v35 = vpop.f32.mrf.mxu0 }
0x2bdb   :  { %v1507_v36 = vadd.f32 %v2207_v29, %v1506_v35 }
0x2bdd   :  { %1536 = vst [vmem:[%s2293_s3 + $0x18] sm:$0xff] %v1507_v36 }
0x2c36   :  { %v1460_v51 = vpop.permute.xlu1 %1459 }
0x2c37   :  { %v1462_v53 = vmul.f32 %v1460_v51, %v1454_v52 }
0x2c39   :  { %1464 = vrot.lane.b32.xlu2 %v1462_v53, %s1798_s27 }
0x2c93   :  { %v1465_v55 = vpop.permute.xlu2 %1464 }
0x2c94   :  { %v1467_v56 = vadd.f32 %v1465_v55, %v1457_v54 }
0x2c96   :  { %1793 = vtanh.f32 %v1467_v56 }
0x2c9c   :  { %v1794_v57 = vpop.eup %1793 }
0x2c9d   :  { %1470 = vrot.lane.b32.xlu0 %v1794_v57, %s1797_s26 }
0x2d0f   :  { %v1471_v58 = vpop.permute.xlu0 %1470 }
0x2d10   :  { %v1473_v59 = vmul.f32 %v1471_v58, %v1454_v52 }
0x2d12   :  { %1476 = vrot.lane.b32.xlu1 %v1473_v59, %s1798_s27 }
0x2d84   :  { %v1477_v60 = vpop.permute.xlu1 %1476 }
0x2d85   :  { %1619 = vmatmul.msk.f32.gmra.mxu3 %vm213_vm5, %v1477_v60 }
0x2e08   :  { %v1530_v61 = vpop.f32.mrf.mxu3 }
0x2e09   :  { %v1531_v62 = vadd.f32 %v2207_v29, %v1530_v61 }
0x2e0b   :  { %1544 = vst [vmem:[%s2293_s3 + $0x58] sm:$0xff] %v1531_v62 }

</bundles_post_ra>
